<compile_context>
chip_gen: v6e
topology: v6e:2x2x1
jax: 0.10.0
libtpu: 0.0.40
codegen_flags: <defaults>
</compile_context>

<pallas_src>
import functools

import jax
import jax.numpy as jnp
from jax.experimental import pallas as pl
from jax.experimental.pallas import tpu as pltpu


NPAD = 128  # lane-dense padding of the classifier-logits output (last dim >= 128 lanes)


# ----------------------------- Pallas kernel -----------------------------

def _layernorm(x, g, b, eps):
    """f32 LayerNorm over the last dim; g, b broadcast over rows."""
    mu = jnp.mean(x, axis=-1, keepdims=True)
    var = jnp.mean(jnp.square(x - mu), axis=-1, keepdims=True)
    return (x - mu) * jax.lax.rsqrt(var + eps) * g + b


def _fused_kernel(
    ids_ref,                 # (B*S, 1) int32  word ids
    pos_ref,                 # (B*S, 1) int32  RoBERTa position ids (pad_idx-offset)
    mask_ref,                # (B, S)   f32    additive attention mask (0 / -1e9)
    wemb_ref,                # (V, H)   f32    word embedding table
    pemb_ref,                # (P, H)   f32    position embedding table
    temb_ref,                # (T, H)   f32    token-type embedding table
    eg_ref, eb_ref,          # (1, H)   f32    embedding LayerNorm params
    wqkv_ref, bqkv_ref,      # (1, H, 3H) bf16 / (1, 1, 3H) f32  (1/sqrt(Dh) folded into Q cols)
    wo_ref, bo_ref,          # (1, H, H)  bf16 / (1, 1, H)  f32
    ln1g_ref, ln1b_ref,      # (1, 1, H)  f32
    w1_ref, b1_ref,          # (1, H, I)  bf16 / (1, 1, I)  f32
    w2_ref, b2_ref,          # (1, I, H)  bf16 / (1, 1, H)  f32
    ln2g_ref, ln2b_ref,      # (1, 1, H)  f32
    clsw_ref, clsb_ref,      # (H, NPAD) f32 / (1, NPAD) f32  (zero-padded classifier head)
    out_ref,                 # (B, NPAD) f32   padded logits (written only on the last layer)
    x_scr,                   # VMEM (B*S, H) f32 — activation carried across grid iterations
    *, B, S, H, Hh, Dh, V, P, eps,
):
    l = pl.program_id(0)
    BS = B * S

    # ---- layer 0: embedding gather (one-hot MXU matmuls) + embedding LayerNorm ----
    @pl.when(l == 0)
    def _():
        # TODO(synk): at production vocab sizes replace the one-hot matmul gather with a
        # DMA / dynamic-slice gather; at V=100 the MXU does this essentially for free.
        word_oh = (jax.lax.broadcasted_iota(jnp.int32, (BS, V), 1)
                   == ids_ref[...]).astype(jnp.float32)
        pos_oh = (jax.lax.broadcasted_iota(jnp.int32, (BS, P), 1)
                  == pos_ref[...]).astype(jnp.float32)
        e = (jnp.dot(word_oh, wemb_ref[...], preferred_element_type=jnp.float32)
             + jnp.dot(pos_oh, pemb_ref[...], preferred_element_type=jnp.float32)
             + temb_ref[0:1, :])            # token_type_ids == 0 (RoBERTa convention)
        x_scr[...] = _layernorm(e, eg_ref[...], eb_ref[...], eps)

    x = x_scr[...]                          # (B*S, H) f32
    xb = x.astype(jnp.bfloat16)

    # ---- fused Q/K/V projection: one (H, 3H) bf16 matmul (scale pre-folded) ----
    qkv = jnp.dot(xb, wqkv_ref[0], preferred_element_type=jnp.float32) + bqkv_ref[0]

    def split_heads(t2d):
        # (B*S, H) -> (Hh*B, S, Dh) with n = h*B + b  (static lane slices + leading reshapes only)
        return jnp.concatenate(
            [t2d[:, h * Dh:(h + 1) * Dh].reshape(B, S, Dh) for h in range(Hh)], axis=0)

    q = split_heads(qkv[:, 0:H])
    k = split_heads(qkv[:, H:2 * H])
    v = split_heads(qkv[:, 2 * H:3 * H])

    # additive mask broadcast to (Hh*B, 1, S), applied once per layer
    m3 = mask_ref[...][:, None, :]                       # (B, 1, S)
    mask_n = jnp.concatenate([m3] * Hh, axis=0)          # (Hh*B, 1, S)

    # ---- attention core: two batched contractions, f32 softmax ----
    s = jnp.einsum('nqd,nkd->nqk', q, k, preferred_element_type=jnp.float32) + mask_n
    s = s - jnp.max(s, axis=-1, keepdims=True)
    p = jnp.exp(s)
    p = p * pl.reciprocal(jnp.sum(p, axis=-1, keepdims=True), approx=True)
    ctx = jnp.einsum('nqk,nkd->nqd', p, v, preferred_element_type=jnp.float32)
    ctx = jnp.concatenate(                               # (Hh*B, S, Dh) -> (B*S, H)
        [ctx[h * B:(h + 1) * B].reshape(B * S, Dh) for h in range(Hh)], axis=-1)

    # ---- output projection + residual + LayerNorm (fused epilogue) ----
    attn = jnp.dot(ctx.astype(jnp.bfloat16), wo_ref[0],
                   preferred_element_type=jnp.float32) + bo_ref[0]
    x = _layernorm(attn + x, ln1g_ref[0], ln1b_ref[0], eps)

    # ---- FFN: matmul + bias + GELU, then matmul + bias + residual + LayerNorm ----
    h1 = jnp.dot(x.astype(jnp.bfloat16), w1_ref[0],
                 preferred_element_type=jnp.float32) + b1_ref[0]
    # TODO(synk): HF RoBERTa uses exact (erf) GELU; tanh-approx GELU used for Mosaic lowering.
    h1 = jax.nn.gelu(h1, approximate=True)
    ffn = jnp.dot(h1.astype(jnp.bfloat16), w2_ref[0],
                  preferred_element_type=jnp.float32) + b2_ref[0]
    x = _layernorm(ffn + x, ln2g_ref[0], ln2b_ref[0], eps)

    x_scr[...] = x                                      # carry to the next layer

    # ---- last layer: CLS rows -> classifier head, lane-dense (B, NPAD) store ----
    @pl.when(l == pl.num_programs(0) - 1)
    def _():
        cls = jnp.concatenate([x[b * S:b * S + 1, :] for b in range(B)], axis=0)   # (B, H)
        out_ref[...] = (jnp.dot(cls, clsw_ref[...], preferred_element_type=jnp.float32)
                        + clsb_ref[...])


# ----------------------------- Model definition -----------------------------

CFG = dict(
    vocab_size=100,
    hidden=32,
    num_layers=2,
    num_heads=2,
    intermediate=64,
    max_pos=16,
    type_vocab=2,
    num_labels=1,
    eps=1e-5,
    pad_token_id=1,
)


def init_params(key, cfg):
    H, I, L = cfg["hidden"], cfg["intermediate"], cfg["num_layers"]
    Dh = H // cfg["num_heads"]
    std = 0.02

    def norm(k, shape):
        return jax.random.normal(k, shape, jnp.float32) * std

    kw, kp, kt, kc, kqkv, kwo, kw1, kw2 = jax.random.split(key, 8)

    # Fold the 1/sqrt(Dh) attention scale into the Q columns of the fused QKV weight.
    # (The Q bias would need the same scaling if it were nonzero.)
    wqkv = norm(kqkv, (L, H, 3 * H))
    wqkv = wqkv.at[:, :, :H].multiply(1.0 / float(Dh) ** 0.5)

    # Classifier head (nn.Linear(H, num_labels)), zero-padded to a lane-dense (H, NPAD) slab.
    cls_w = jnp.zeros((H, NPAD), jnp.float32).at[:, :cfg["num_labels"]].set(
        norm(kc, (H, cfg["num_labels"])))
    cls_b = jnp.zeros((1, NPAD), jnp.float32)

    return {
        "word_emb": norm(kw, (cfg["vocab_size"], H)),
        "pos_emb": norm(kp, (cfg["max_pos"], H)),
        "type_emb": norm(kt, (cfg["type_vocab"], H)),
        "emb_ln_g": jnp.ones((1, H), jnp.float32),
        "emb_ln_b": jnp.zeros((1, H), jnp.float32),
        "cls_w_pad": cls_w,
        "cls_b_pad": cls_b,
        # per-layer weights stacked on a leading layer axis; matmul weights bf16, rest f32
        "wqkv": wqkv.astype(jnp.bfloat16),
        "bqkv": jnp.zeros((L, 1, 3 * H), jnp.float32),
        "wo": norm(kwo, (L, H, H)).astype(jnp.bfloat16),
        "bo": jnp.zeros((L, 1, H), jnp.float32),
        "ln1_g": jnp.ones((L, 1, H), jnp.float32),
        "ln1_b": jnp.zeros((L, 1, H), jnp.float32),
        "w1": norm(kw1, (L, H, I)).astype(jnp.bfloat16),
        "b1": jnp.zeros((L, 1, I), jnp.float32),
        "w2": norm(kw2, (L, I, H)).astype(jnp.bfloat16),
        "b2": jnp.zeros((L, 1, H), jnp.float32),
        "ln2_g": jnp.ones((L, 1, H), jnp.float32),
        "ln2_b": jnp.zeros((L, 1, H), jnp.float32),
    }


def roberta_classifier_forward(params, input_ids, attention_mask, cfg=CFG):
    B, S = input_ids.shape
    H, I, L = cfg["hidden"], cfg["intermediate"], cfg["num_layers"]
    Hh = cfg["num_heads"]
    Dh = H // Hh
    V, P, eps = cfg["vocab_size"], cfg["max_pos"], cfg["eps"]
    pad_idx = cfg["pad_token_id"]
    BS = B * S

    # ---- tiny wrapper glue (fused by XLA): ids / RoBERTa position ids / additive mask ----
    mask_i = attention_mask.astype(jnp.int32)
    pos_ids = (jnp.cumsum(mask_i, axis=1) * mask_i + pad_idx).astype(jnp.int32)
    ids_2d = input_ids.astype(jnp.int32).reshape(BS, 1)
    pos_2d = pos_ids.reshape(BS, 1)
    add_mask = (1.0 - attention_mask.astype(jnp.float32)) * -1e9     # (B, S)

    kernel = functools.partial(_fused_kernel, B=B, S=S, H=H, Hh=Hh, Dh=Dh,
                               V=V, P=P, eps=eps)

    const = lambda l: (0, 0)          # VMEM-resident across all layers (fetched once)
    perlayer = lambda l: (l, 0, 0)    # streamed: layer l+1 weights DMA'd while layer l computes

    in_specs = [
        pl.BlockSpec((BS, 1), const),                     # word ids
        pl.BlockSpec((BS, 1), const),                     # position ids
        pl.BlockSpec((B, S), const),                      # additive attention mask
        pl.BlockSpec((V, H), const),                      # word_emb
        pl.BlockSpec((P, H), const),                      # pos_emb
        pl.BlockSpec((cfg["type_vocab"], H), const),      # type_emb
        pl.BlockSpec((1, H), const),                      # emb_ln_g
        pl.BlockSpec((1, H), const),                      # emb_ln_b
        pl.BlockSpec((1, H, 3 * H), perlayer),            # wqkv
        pl.BlockSpec((1, 1, 3 * H), perlayer),            # bqkv
        pl.BlockSpec((1, H, H), perlayer),                # wo
        pl.BlockSpec((1, 1, H), perlayer),                # bo
        pl.BlockSpec((1, 1, H), perlayer),                # ln1_g
        pl.BlockSpec((1, 1, H), perlayer),                # ln1_b
        pl.BlockSpec((1, H, I), perlayer),                # w1
        pl.BlockSpec((1, 1, I), perlayer),                # b1
        pl.BlockSpec((1, I, H), perlayer),                # w2
        pl.BlockSpec((1, 1, H), perlayer),                # b2
        pl.BlockSpec((1, 1, H), perlayer),                # ln2_g
        pl.BlockSpec((1, 1, H), perlayer),                # ln2_b
        pl.BlockSpec((H, NPAD), const),                   # cls_w (padded)
        pl.BlockSpec((1, NPAD), const),                   # cls_b (padded)
    ]

    # advisory cost estimate so XLA can schedule neighbours around the single launch
    flops_layer = (2 * BS * H * 3 * H + 2 * 2 * B * Hh * S * S * Dh
                   + 2 * BS * H * H + 2 * 2 * BS * H * I)
    flops = L * flops_layer + 2 * BS * (V + P) * H + 2 * B * H * NPAD
    transcendentals = L * (B * Hh * S * S + BS * I)
    param_bytes = sum(int(p.size) * p.dtype.itemsize
                      for p in jax.tree_util.tree_leaves(params))
    bytes_accessed = param_bytes + 4 * (2 * BS + B * S + B * NPAD)

    logits_pad = pl.pallas_call(
        kernel,
        out_shape=jax.ShapeDtypeStruct((B, NPAD), jnp.float32),
        grid_spec=pltpu.PrefetchScalarGridSpec(
            num_scalar_prefetch=0,
            grid=(L,),
            in_specs=in_specs,
            out_specs=pl.BlockSpec((B, NPAD), const),
            scratch_shapes=[pltpu.VMEM((BS, H), jnp.float32)],
        ),
        compiler_params=pltpu.CompilerParams(
            # layers are sequential (carried state).
            # TODO(synk): at production sizes add a leading "parallel" token-block axis for v7x.
            dimension_semantics=("arbitrary",)),
        cost_estimate=pl.CostEstimate(
            flops=flops, transcendentals=transcendentals, bytes_accessed=bytes_accessed),
    )(
        ids_2d, pos_2d, add_mask,
        params["word_emb"], params["pos_emb"], params["type_emb"],
        params["emb_ln_g"], params["emb_ln_b"],
        params["wqkv"], params["bqkv"], params["wo"], params["bo"],
        params["ln1_g"], params["ln1_b"], params["w1"], params["b1"],
        params["w2"], params["b2"], params["ln2_g"], params["ln2_b"],
        params["cls_w_pad"], params["cls_b_pad"],
    )

    return logits_pad[:, :cfg["num_labels"]]


# ----------------------------- main -----------------------------

if __name__ == "__main__":
    key = jax.random.PRNGKey(0)
    pkey, ikey = jax.random.split(key)

    params = init_params(pkey, CFG)

    B, S = 2, 8
    input_ids = jax.random.randint(ikey, (B, S), 0, CFG["vocab_size"], dtype=jnp.int32)
    attention_mask = jnp.array(
        [[1, 1, 1, 1, 1, 1, 1, 1],
         [1, 1, 1, 1, 1, 1, 0, 0]], dtype=jnp.int32)

    fwd = jax.jit(roberta_classifier_forward)
    logits = fwd(params, input_ids, attention_mask)
    logits = jax.block_until_ready(logits)
    assert logits.shape == (B, CFG["num_labels"])
    print("KERNEL_OK")
</pallas_src>

<mosaic_0001>
module attributes {stable_mosaic.version = 11 : i64} {
  func.func @_fused_kernel(%arg0: i32, %arg1: memref<16x1xi32, #tpu.memory_space<vmem>>, %arg2: memref<16x1xi32, #tpu.memory_space<vmem>>, %arg3: memref<2x8xf32, #tpu.memory_space<vmem>>, %arg4: memref<100x32xf32, #tpu.memory_space<vmem>>, %arg5: memref<16x32xf32, #tpu.memory_space<vmem>>, %arg6: memref<2x32xf32, #tpu.memory_space<vmem>>, %arg7: memref<1x32xf32, #tpu.memory_space<vmem>>, %arg8: memref<1x32xf32, #tpu.memory_space<vmem>>, %arg9: memref<1x32x96xbf16, #tpu.memory_space<vmem>>, %arg10: memref<1x1x96xf32, #tpu.memory_space<vmem>>, %arg11: memref<1x32x32xbf16, #tpu.memory_space<vmem>>, %arg12: memref<1x1x32xf32, #tpu.memory_space<vmem>>, %arg13: memref<1x1x32xf32, #tpu.memory_space<vmem>>, %arg14: memref<1x1x32xf32, #tpu.memory_space<vmem>>, %arg15: memref<1x32x64xbf16, #tpu.memory_space<vmem>>, %arg16: memref<1x1x64xf32, #tpu.memory_space<vmem>>, %arg17: memref<1x64x32xbf16, #tpu.memory_space<vmem>>, %arg18: memref<1x1x32xf32, #tpu.memory_space<vmem>>, %arg19: memref<1x1x32xf32, #tpu.memory_space<vmem>>, %arg20: memref<1x1x32xf32, #tpu.memory_space<vmem>>, %arg21: memref<32x128xf32, #tpu.memory_space<vmem>>, %arg22: memref<1x128xf32, #tpu.memory_space<vmem>>, %arg23: memref<2x128xf32, #tpu.memory_space<vmem>>, %arg24: memref<16x32xf32, #tpu.memory_space<vmem>>) attributes {dimension_semantics = [#tpu.dimension_semantics<arbitrary>], iteration_bounds = array<i64: 2>, scalar_prefetch = 0 : i64, scratch_operands = 1 : i64, tpu.core_type = #tpu.core_type<tc>, window_params = [{pipeline_mode = #tpu.pipeline_mode<synchronous>, transform_indices = @transform_0, window_bounds = array<i64: 16, 1>}, {pipeline_mode = #tpu.pipeline_mode<synchronous>, transform_indices = @transform_1, window_bounds = array<i64: 16, 1>}, {pipeline_mode = #tpu.pipeline_mode<synchronous>, transform_indices = @transform_2, window_bounds = array<i64: 2, 8>}, {pipeline_mode = #tpu.pipeline_mode<synchronous>, transform_indices = @transform_3, window_bounds = array<i64: 100, 32>}, {pipeline_mode = #tpu.pipeline_mode<synchronous>, transform_indices = @transform_4, window_bounds = array<i64: 16, 32>}, {pipeline_mode = #tpu.pipeline_mode<synchronous>, transform_indices = @transform_5, window_bounds = array<i64: 2, 32>}, {pipeline_mode = #tpu.pipeline_mode<synchronous>, transform_indices = @transform_6, window_bounds = array<i64: 1, 32>}, {pipeline_mode = #tpu.pipeline_mode<synchronous>, transform_indices = @transform_7, window_bounds = array<i64: 1, 32>}, {transform_indices = @transform_8, window_bounds = array<i64: 1, 32, 96>}, {transform_indices = @transform_9, window_bounds = array<i64: 1, 1, 96>}, {transform_indices = @transform_10, window_bounds = array<i64: 1, 32, 32>}, {transform_indices = @transform_11, window_bounds = array<i64: 1, 1, 32>}, {transform_indices = @transform_12, window_bounds = array<i64: 1, 1, 32>}, {transform_indices = @transform_13, window_bounds = array<i64: 1, 1, 32>}, {transform_indices = @transform_14, window_bounds = array<i64: 1, 32, 64>}, {transform_indices = @transform_15, window_bounds = array<i64: 1, 1, 64>}, {transform_indices = @transform_16, window_bounds = array<i64: 1, 64, 32>}, {transform_indices = @transform_17, window_bounds = array<i64: 1, 1, 32>}, {transform_indices = @transform_18, window_bounds = array<i64: 1, 1, 32>}, {transform_indices = @transform_19, window_bounds = array<i64: 1, 1, 32>}, {pipeline_mode = #tpu.pipeline_mode<synchronous>, transform_indices = @transform_20, window_bounds = array<i64: 32, 128>}, {pipeline_mode = #tpu.pipeline_mode<synchronous>, transform_indices = @transform_21, window_bounds = array<i64: 1, 128>}, {pipeline_mode = #tpu.pipeline_mode<synchronous>, transform_indices = @transform_22, window_bounds = array<i64: 2, 128>}]} {
    %c0_i32 = arith.constant 0 : i32
    %0 = arith.cmpi eq, %arg0, %c0_i32 : i32
    %1 = arith.extui %0 : i1 to i32
    %c0_i32_0 = arith.constant 0 : i32
    %2 = arith.cmpi ne, %1, %c0_i32_0 : i32
    scf.if %2 {
      %147 = tpu.iota {dimensions = array<i32: 1>} : vector<16x100xi32>
      %c0_64 = arith.constant 0 : index
      %c0_65 = arith.constant 0 : index
      %148 = vector.load %arg1[%c0_64, %c0_65] : memref<16x1xi32, #tpu.memory_space<vmem>>, vector<16x1xi32>
      %149 = vector.broadcast %148 : vector<16x1xi32> to vector<16x100xi32>
      %150 = arith.cmpi eq, %147, %149 : vector<16x100xi32>
      %151 = arith.extui %150 : vector<16x100xi1> to vector<16x100xi32>
      %152 = arith.sitofp %151 : vector<16x100xi32> to vector<16x100xf32>
      %153 = tpu.iota {dimensions = array<i32: 1>} : vector<16x16xi32>
      %c0_66 = arith.constant 0 : index
      %c0_67 = arith.constant 0 : index
      %154 = vector.load %arg2[%c0_66, %c0_67] : memref<16x1xi32, #tpu.memory_space<vmem>>, vector<16x1xi32>
      %155 = vector.broadcast %154 : vector<16x1xi32> to vector<16x16xi32>
      %156 = arith.cmpi eq, %153, %155 : vector<16x16xi32>
      %157 = arith.extui %156 : vector<16x16xi1> to vector<16x16xi32>
      %158 = arith.sitofp %157 : vector<16x16xi32> to vector<16x16xf32>
      %c0_68 = arith.constant 0 : index
      %c0_69 = arith.constant 0 : index
      %159 = vector.load %arg4[%c0_68, %c0_69] : memref<100x32xf32, #tpu.memory_space<vmem>>, vector<100x32xf32>
      %cst_70 = arith.constant dense<0.000000e+00> : vector<16x32xf32>
      %160 = tpu.matmul %152, %159, %cst_70 {dimension_numbers = #tpu.dot_dimension_numbers<[1], [0], [0], [1], [0, 0, 1, 1], [], []>} : vector<16x100xf32>, vector<100x32xf32>, vector<16x32xf32> -> vector<16x32xf32>
      %c0_71 = arith.constant 0 : index
      %c0_72 = arith.constant 0 : index
      %161 = vector.load %arg5[%c0_71, %c0_72] : memref<16x32xf32, #tpu.memory_space<vmem>>, vector<16x32xf32>
      %cst_73 = arith.constant dense<0.000000e+00> : vector<16x32xf32>
      %162 = tpu.matmul %158, %161, %cst_73 {dimension_numbers = #tpu.dot_dimension_numbers<[1], [0], [0], [1], [0, 0, 1, 1], [], []>} : vector<16x16xf32>, vector<16x32xf32>, vector<16x32xf32> -> vector<16x32xf32>
      %163 = arith.addf %160, %162 : vector<16x32xf32>
      %c0_74 = arith.constant 0 : index
      %c0_75 = arith.constant 0 : index
      %164 = vector.load %arg6[%c0_74, %c0_75] : memref<2x32xf32, #tpu.memory_space<vmem>>, vector<1x32xf32>
      %165 = vector.broadcast %164 : vector<1x32xf32> to vector<16x32xf32>
      %166 = arith.addf %163, %165 : vector<16x32xf32>
      %c0_76 = arith.constant 0 : index
      %c0_77 = arith.constant 0 : index
      %167 = vector.load %arg7[%c0_76, %c0_77] : memref<1x32xf32, #tpu.memory_space<vmem>>, vector<1x32xf32>
      %c0_78 = arith.constant 0 : index
      %c0_79 = arith.constant 0 : index
      %168 = vector.load %arg8[%c0_78, %c0_79] : memref<1x32xf32, #tpu.memory_space<vmem>>, vector<1x32xf32>
      %cst_80 = arith.constant dense<0.000000e+00> : vector<16xf32>
      %169 = vector.multi_reduction <add>, %166, %cst_80 [1] : vector<16x32xf32> to vector<16xf32>
      %170 = vector.shape_cast %169 : vector<16xf32> to vector<16x1xf32>
      %cst_81 = arith.constant 3.200000e+01 : f32
      %171 = vector.broadcast %cst_81 : f32 to vector<16x1xf32>
      %172 = arith.divf %170, %171 : vector<16x1xf32>
      %173 = vector.broadcast %172 : vector<16x1xf32> to vector<16x32xf32>
      %174 = arith.subf %166, %173 : vector<16x32xf32>
      %175 = arith.mulf %174, %174 : vector<16x32xf32>
      %cst_82 = arith.constant dense<0.000000e+00> : vector<16xf32>
      %176 = vector.multi_reduction <add>, %175, %cst_82 [1] : vector<16x32xf32> to vector<16xf32>
      %177 = vector.shape_cast %176 : vector<16xf32> to vector<16x1xf32>
      %cst_83 = arith.constant 3.200000e+01 : f32
      %178 = vector.broadcast %cst_83 : f32 to vector<16x1xf32>
      %179 = arith.divf %177, %178 : vector<16x1xf32>
      %180 = vector.broadcast %172 : vector<16x1xf32> to vector<16x32xf32>
      %181 = arith.subf %166, %180 : vector<16x32xf32>
      %cst_84 = arith.constant 9.99999974E-6 : f32
      %182 = vector.broadcast %cst_84 : f32 to vector<16x1xf32>
      %183 = arith.addf %179, %182 : vector<16x1xf32>
      %184 = math.rsqrt %183 : vector<16x1xf32>
      %185 = vector.broadcast %184 : vector<16x1xf32> to vector<16x32xf32>
      %186 = arith.mulf %181, %185 : vector<16x32xf32>
      %187 = vector.broadcast %167 : vector<1x32xf32> to vector<16x32xf32>
      %188 = arith.mulf %186, %187 : vector<16x32xf32>
      %189 = vector.broadcast %168 : vector<1x32xf32> to vector<16x32xf32>
      %190 = arith.addf %188, %189 : vector<16x32xf32>
      %c0_85 = arith.constant 0 : index
      %c0_86 = arith.constant 0 : index
      %191 = vector.load %arg24[%c0_85, %c0_86] : memref<16x32xf32, #tpu.memory_space<vmem>>, vector<16x32xf32>
      tpu.vector_store %arg24[%c0_85, %c0_86], %190 {strides = array<i32>} : memref<16x32xf32, #tpu.memory_space<vmem>>, vector<16x32xf32>,
    } else {
    }
    %c0 = arith.constant 0 : index
    %c0_1 = arith.constant 0 : index
    %3 = vector.load %arg24[%c0, %c0_1] : memref<16x32xf32, #tpu.memory_space<vmem>>, vector<16x32xf32>
    %4 = arith.truncf %3 : vector<16x32xf32> to vector<16x32xbf16>
    %c0_2 = arith.constant 0 : index
    %c0_3 = arith.constant 0 : index
    %c0_4 = arith.constant 0 : index
    %5 = vector.load %arg9[%c0_2, %c0_3, %c0_4] : memref<1x32x96xbf16, #tpu.memory_space<vmem>>, vector<1x32x96xbf16>
    %6 = vector.shape_cast %5 : vector<1x32x96xbf16> to vector<32x96xbf16>
    %cst = arith.constant dense<0.000000e+00> : vector<16x96xf32>
    %7 = tpu.matmul %4, %6, %cst {dimension_numbers = #tpu.dot_dimension_numbers<[1], [0], [0], [1], [0, 0, 1, 1], [], []>} : vector<16x32xbf16>, vector<32x96xbf16>, vector<16x96xf32> -> vector<16x96xf32>
    %c0_5 = arith.constant 0 : index
    %c0_6 = arith.constant 0 : index
    %c0_7 = arith.constant 0 : index
    %8 = vector.load %arg10[%c0_5, %c0_6, %c0_7] : memref<1x1x96xf32, #tpu.memory_space<vmem>>, vector<1x1x96xf32>
    %9 = vector.shape_cast %8 : vector<1x1x96xf32> to vector<1x96xf32>
    %10 = vector.broadcast %9 : vector<1x96xf32> to vector<16x96xf32>
    %11 = arith.addf %7, %10 : vector<16x96xf32>
    %12 = vector.extract_strided_slice %11 {offsets = [0, 0], sizes = [16, 32], strides = [1, 1]} : vector<16x96xf32> to vector<16x32xf32>
    %13 = vector.extract_strided_slice %12 {offsets = [0, 0], sizes = [16, 16], strides = [1, 1]} : vector<16x32xf32> to vector<16x16xf32>
    %14 = vector.shape_cast %13 : vector<16x16xf32> to vector<2x8x16xf32>
    %15 = vector.extract_strided_slice %12 {offsets = [0, 16], sizes = [16, 16], strides = [1, 1]} : vector<16x32xf32> to vector<16x16xf32>
    %16 = vector.shape_cast %15 : vector<16x16xf32> to vector<2x8x16xf32>
    %17 = tpu.concatenate %14, %16 in 0 : vector<2x8x16xf32>, vector<2x8x16xf32> -> vector<4x8x16xf32>
    %18 = vector.extract_strided_slice %11 {offsets = [0, 32], sizes = [16, 32], strides = [1, 1]} : vector<16x96xf32> to vector<16x32xf32>
    %19 = vector.extract_strided_slice %18 {offsets = [0, 0], sizes = [16, 16], strides = [1, 1]} : vector<16x32xf32> to vector<16x16xf32>
    %20 = vector.shape_cast %19 : vector<16x16xf32> to vector<2x8x16xf32>
    %21 = vector.extract_strided_slice %18 {offsets = [0, 16], sizes = [16, 16], strides = [1, 1]} : vector<16x32xf32> to vector<16x16xf32>
    %22 = vector.shape_cast %21 : vector<16x16xf32> to vector<2x8x16xf32>
    %23 = tpu.concatenate %20, %22 in 0 : vector<2x8x16xf32>, vector<2x8x16xf32> -> vector<4x8x16xf32>
    %24 = vector.extract_strided_slice %11 {offsets = [0, 64], sizes = [16, 32], strides = [1, 1]} : vector<16x96xf32> to vector<16x32xf32>
    %25 = vector.extract_strided_slice %24 {offsets = [0, 0], sizes = [16, 16], strides = [1, 1]} : vector<16x32xf32> to vector<16x16xf32>
    %26 = vector.shape_cast %25 : vector<16x16xf32> to vector<2x8x16xf32>
    %27 = vector.extract_strided_slice %24 {offsets = [0, 16], sizes = [16, 16], strides = [1, 1]} : vector<16x32xf32> to vector<16x16xf32>
    %28 = vector.shape_cast %27 : vector<16x16xf32> to vector<2x8x16xf32>
    %29 = tpu.concatenate %26, %28 in 0 : vector<2x8x16xf32>, vector<2x8x16xf32> -> vector<4x8x16xf32>
    %c0_8 = arith.constant 0 : index
    %c0_9 = arith.constant 0 : index
    %30 = vector.load %arg3[%c0_8, %c0_9] : memref<2x8xf32, #tpu.memory_space<vmem>>, vector<2x8xf32>
    %31 = vector.shape_cast %30 : vector<2x8xf32> to vector<2x1x8xf32>
    %32 = tpu.concatenate %31, %31 in 0 : vector<2x1x8xf32>, vector<2x1x8xf32> -> vector<4x1x8xf32>
    "tpu.trace_start"() <{level = 10 : i32, message = "nqd,nkd->nqk"}> : () -> ()
    %cst_10 = arith.constant dense<0.000000e+00> : vector<4x8x8xf32>
    %33 = tpu.matmul %17, %23, %cst_10 {dimension_numbers = #tpu.dot_dimension_numbers<[2], [2], [1], [1], [0, 0, 0, 1, 1, 1], [0], [0]>} : vector<4x8x16xf32>, vector<4x8x16xf32>, vector<4x8x8xf32> -> vector<4x8x8xf32>
    "tpu.trace_stop"() : () -> ()
    %34 = vector.broadcast %32 : vector<4x1x8xf32> to vector<4x8x8xf32>
    %35 = arith.addf %33, %34 : vector<4x8x8xf32>
    %cst_11 = arith.constant dense<0xFF800000> : vector<4x8xf32>
    %36 = vector.multi_reduction <maximumf>, %35, %cst_11 [2] : vector<4x8x8xf32> to vector<4x8xf32>
    %37 = vector.shape_cast %36 : vector<4x8xf32> to vector<4x8x1xf32>
    %38 = vector.broadcast %37 : vector<4x8x1xf32> to vector<4x8x8xf32>
    %39 = arith.subf %35, %38 : vector<4x8x8xf32>
    %40 = math.exp %39 : vector<4x8x8xf32>
    %cst_12 = arith.constant dense<0.000000e+00> : vector<4x8xf32>
    %41 = vector.multi_reduction <add>, %40, %cst_12 [2] : vector<4x8x8xf32> to vector<4x8xf32>
    %42 = vector.shape_cast %41 : vector<4x8xf32> to vector<4x8x1xf32>
    %43 = tpu.reciprocal %42 {approx = true} : vector<4x8x1xf32> -> vector<4x8x1xf32>
    %44 = vector.broadcast %43 : vector<4x8x1xf32> to vector<4x8x8xf32>
    %45 = arith.mulf %40, %44 : vector<4x8x8xf32>
    "tpu.trace_start"() <{level = 10 : i32, message = "nqk,nkd->nqd"}> : () -> ()
    %cst_13 = arith.constant dense<0.000000e+00> : vector<4x8x16xf32>
    %46 = tpu.matmul %45, %29, %cst_13 {dimension_numbers = #tpu.dot_dimension_numbers<[2], [1], [1], [2], [0, 0, 0, 1, 1, 2], [0], [0]>} : vector<4x8x8xf32>, vector<4x8x16xf32>, vector<4x8x16xf32> -> vector<4x8x16xf32>
    "tpu.trace_stop"() : () -> ()
    %47 = vector.extract_strided_slice %46 {offsets = [0, 0, 0], sizes = [2, 8, 16], strides = [1, 1, 1]} : vector<4x8x16xf32> to vector<2x8x16xf32>
    %48 = vector.shape_cast %47 : vector<2x8x16xf32> to vector<16x16xf32>
    %49 = vector.extract_strided_slice %46 {offsets = [2, 0, 0], sizes = [2, 8, 16], strides = [1, 1, 1]} : vector<4x8x16xf32> to vector<2x8x16xf32>
    %50 = vector.shape_cast %49 : vector<2x8x16xf32> to vector<16x16xf32>
    %51 = tpu.concatenate %48, %50 in 1 : vector<16x16xf32>, vector<16x16xf32> -> vector<16x32xf32>
    %52 = arith.truncf %51 : vector<16x32xf32> to vector<16x32xbf16>
    %c0_14 = arith.constant 0 : index
    %c0_15 = arith.constant 0 : index
    %c0_16 = arith.constant 0 : index
    %53 = vector.load %arg11[%c0_14, %c0_15, %c0_16] : memref<1x32x32xbf16, #tpu.memory_space<vmem>>, vector<1x32x32xbf16>
    %54 = vector.shape_cast %53 : vector<1x32x32xbf16> to vector<32x32xbf16>
    %cst_17 = arith.constant dense<0.000000e+00> : vector<16x32xf32>
    %55 = tpu.matmul %52, %54, %cst_17 {dimension_numbers = #tpu.dot_dimension_numbers<[1], [0], [0], [1], [0, 0, 1, 1], [], []>} : vector<16x32xbf16>, vector<32x32xbf16>, vector<16x32xf32> -> vector<16x32xf32>
    %c0_18 = arith.constant 0 : index
    %c0_19 = arith.constant 0 : index
    %c0_20 = arith.constant 0 : index
    %56 = vector.load %arg12[%c0_18, %c0_19, %c0_20] : memref<1x1x32xf32, #tpu.memory_space<vmem>>, vector<1x1x32xf32>
    %57 = vector.shape_cast %56 : vector<1x1x32xf32> to vector<1x32xf32>
    %58 = vector.broadcast %57 : vector<1x32xf32> to vector<16x32xf32>
    %59 = arith.addf %55, %58 : vector<16x32xf32>
    %60 = arith.addf %59, %3 : vector<16x32xf32>
    %c0_21 = arith.constant 0 : index
    %c0_22 = arith.constant 0 : index
    %c0_23 = arith.constant 0 : index
    %61 = vector.load %arg13[%c0_21, %c0_22, %c0_23] : memref<1x1x32xf32, #tpu.memory_space<vmem>>, vector<1x1x32xf32>
    %62 = vector.shape_cast %61 : vector<1x1x32xf32> to vector<1x32xf32>
    %c0_24 = arith.constant 0 : index
    %c0_25 = arith.constant 0 : index
    %c0_26 = arith.constant 0 : index
    %63 = vector.load %arg14[%c0_24, %c0_25, %c0_26] : memref<1x1x32xf32, #tpu.memory_space<vmem>>, vector<1x1x32xf32>
    %64 = vector.shape_cast %63 : vector<1x1x32xf32> to vector<1x32xf32>
    %cst_27 = arith.constant dense<0.000000e+00> : vector<16xf32>
    %65 = vector.multi_reduction <add>, %60, %cst_27 [1] : vector<16x32xf32> to vector<16xf32>
    %66 = vector.shape_cast %65 : vector<16xf32> to vector<16x1xf32>
    %cst_28 = arith.constant 3.200000e+01 : f32
    %67 = vector.broadcast %cst_28 : f32 to vector<16x1xf32>
    %68 = arith.divf %66, %67 : vector<16x1xf32>
    %69 = vector.broadcast %68 : vector<16x1xf32> to vector<16x32xf32>
    %70 = arith.subf %60, %69 : vector<16x32xf32>
    %71 = arith.mulf %70, %70 : vector<16x32xf32>
    %cst_29 = arith.constant dense<0.000000e+00> : vector<16xf32>
    %72 = vector.multi_reduction <add>, %71, %cst_29 [1] : vector<16x32xf32> to vector<16xf32>
    %73 = vector.shape_cast %72 : vector<16xf32> to vector<16x1xf32>
    %cst_30 = arith.constant 3.200000e+01 : f32
    %74 = vector.broadcast %cst_30 : f32 to vector<16x1xf32>
    %75 = arith.divf %73, %74 : vector<16x1xf32>
    %76 = vector.broadcast %68 : vector<16x1xf32> to vector<16x32xf32>
    %77 = arith.subf %60, %76 : vector<16x32xf32>
    %cst_31 = arith.constant 9.99999974E-6 : f32
    %78 = vector.broadcast %cst_31 : f32 to vector<16x1xf32>
    %79 = arith.addf %75, %78 : vector<16x1xf32>
    %80 = math.rsqrt %79 : vector<16x1xf32>
    %81 = vector.broadcast %80 : vector<16x1xf32> to vector<16x32xf32>
    %82 = arith.mulf %77, %81 : vector<16x32xf32>
    %83 = vector.broadcast %62 : vector<1x32xf32> to vector<16x32xf32>
    %84 = arith.mulf %82, %83 : vector<16x32xf32>
    %85 = vector.broadcast %64 : vector<1x32xf32> to vector<16x32xf32>
    %86 = arith.addf %84, %85 : vector<16x32xf32>
    %87 = arith.truncf %86 : vector<16x32xf32> to vector<16x32xbf16>
    %c0_32 = arith.constant 0 : index
    %c0_33 = arith.constant 0 : index
    %c0_34 = arith.constant 0 : index
    %88 = vector.load %arg15[%c0_32, %c0_33, %c0_34] : memref<1x32x64xbf16, #tpu.memory_space<vmem>>, vector<1x32x64xbf16>
    %89 = vector.shape_cast %88 : vector<1x32x64xbf16> to vector<32x64xbf16>
    %cst_35 = arith.constant dense<0.000000e+00> : vector<16x64xf32>
    %90 = tpu.matmul %87, %89, %cst_35 {dimension_numbers = #tpu.dot_dimension_numbers<[1], [0], [0], [1], [0, 0, 1, 1], [], []>} : vector<16x32xbf16>, vector<32x64xbf16>, vector<16x64xf32> -> vector<16x64xf32>
    %c0_36 = arith.constant 0 : index
    %c0_37 = arith.constant 0 : index
    %c0_38 = arith.constant 0 : index
    %91 = vector.load %arg16[%c0_36, %c0_37, %c0_38] : memref<1x1x64xf32, #tpu.memory_space<vmem>>, vector<1x1x64xf32>
    %92 = vector.shape_cast %91 : vector<1x1x64xf32> to vector<1x64xf32>
    %93 = vector.broadcast %92 : vector<1x64xf32> to vector<16x64xf32>
    %94 = arith.addf %90, %93 : vector<16x64xf32>
    %95 = arith.mulf %94, %94 : vector<16x64xf32>
    %96 = arith.mulf %94, %95 : vector<16x64xf32>
    %cst_39 = arith.constant 4.471500e-02 : f32
    %97 = vector.broadcast %cst_39 : f32 to vector<16x64xf32>
    %98 = arith.mulf %97, %96 : vector<16x64xf32>
    %99 = arith.addf %94, %98 : vector<16x64xf32>
    %cst_40 = arith.constant 0.797884583 : f32
    %100 = vector.broadcast %cst_40 : f32 to vector<16x64xf32>
    %101 = arith.mulf %100, %99 : vector<16x64xf32>
    %102 = math.tanh %101 : vector<16x64xf32>
    %cst_41 = arith.constant 1.000000e+00 : f32
    %103 = vector.broadcast %cst_41 : f32 to vector<16x64xf32>
    %104 = arith.addf %103, %102 : vector<16x64xf32>
    %cst_42 = arith.constant 5.000000e-01 : f32
    %105 = vector.broadcast %cst_42 : f32 to vector<16x64xf32>
    %106 = arith.mulf %105, %104 : vector<16x64xf32>
    %107 = arith.mulf %94, %106 : vector<16x64xf32>
    %108 = arith.truncf %107 : vector<16x64xf32> to vector<16x64xbf16>
    %c0_43 = arith.constant 0 : index
    %c0_44 = arith.constant 0 : index
    %c0_45 = arith.constant 0 : index
    %109 = vector.load %arg17[%c0_43, %c0_44, %c0_45] : memref<1x64x32xbf16, #tpu.memory_space<vmem>>, vector<1x64x32xbf16>
    %110 = vector.shape_cast %109 : vector<1x64x32xbf16> to vector<64x32xbf16>
    %cst_46 = arith.constant dense<0.000000e+00> : vector<16x32xf32>
    %111 = tpu.matmul %108, %110, %cst_46 {dimension_numbers = #tpu.dot_dimension_numbers<[1], [0], [0], [1], [0, 0, 1, 1], [], []>} : vector<16x64xbf16>, vector<64x32xbf16>, vector<16x32xf32> -> vector<16x32xf32>
    %c0_47 = arith.constant 0 : index
    %c0_48 = arith.constant 0 : index
    %c0_49 = arith.constant 0 : index
    %112 = vector.load %arg18[%c0_47, %c0_48, %c0_49] : memref<1x1x32xf32, #tpu.memory_space<vmem>>, vector<1x1x32xf32>
    %113 = vector.shape_cast %112 : vector<1x1x32xf32> to vector<1x32xf32>
    %114 = vector.broadcast %113 : vector<1x32xf32> to vector<16x32xf32>
    %115 = arith.addf %111, %114 : vector<16x32xf32>
    %116 = arith.addf %115, %86 : vector<16x32xf32>
    %c0_50 = arith.constant 0 : index
    %c0_51 = arith.constant 0 : index
    %c0_52 = arith.constant 0 : index
    %117 = vector.load %arg19[%c0_50, %c0_51, %c0_52] : memref<1x1x32xf32, #tpu.memory_space<vmem>>, vector<1x1x32xf32>
    %118 = vector.shape_cast %117 : vector<1x1x32xf32> to vector<1x32xf32>
    %c0_53 = arith.constant 0 : index
    %c0_54 = arith.constant 0 : index
    %c0_55 = arith.constant 0 : index
    %119 = vector.load %arg20[%c0_53, %c0_54, %c0_55] : memref<1x1x32xf32, #tpu.memory_space<vmem>>, vector<1x1x32xf32>
    %120 = vector.shape_cast %119 : vector<1x1x32xf32> to vector<1x32xf32>
    %cst_56 = arith.constant dense<0.000000e+00> : vector<16xf32>
    %121 = vector.multi_reduction <add>, %116, %cst_56 [1] : vector<16x32xf32> to vector<16xf32>
    %122 = vector.shape_cast %121 : vector<16xf32> to vector<16x1xf32>
    %cst_57 = arith.constant 3.200000e+01 : f32
    %123 = vector.broadcast %cst_57 : f32 to vector<16x1xf32>
    %124 = arith.divf %122, %123 : vector<16x1xf32>
    %125 = vector.broadcast %124 : vector<16x1xf32> to vector<16x32xf32>
    %126 = arith.subf %116, %125 : vector<16x32xf32>
    %127 = arith.mulf %126, %126 : vector<16x32xf32>
    %cst_58 = arith.constant dense<0.000000e+00> : vector<16xf32>
    %128 = vector.multi_reduction <add>, %127, %cst_58 [1] : vector<16x32xf32> to vector<16xf32>
    %129 = vector.shape_cast %128 : vector<16xf32> to vector<16x1xf32>
    %cst_59 = arith.constant 3.200000e+01 : f32
    %130 = vector.broadcast %cst_59 : f32 to vector<16x1xf32>
    %131 = arith.divf %129, %130 : vector<16x1xf32>
    %132 = vector.broadcast %124 : vector<16x1xf32> to vector<16x32xf32>
    %133 = arith.subf %116, %132 : vector<16x32xf32>
    %cst_60 = arith.constant 9.99999974E-6 : f32
    %134 = vector.broadcast %cst_60 : f32 to vector<16x1xf32>
    %135 = arith.addf %131, %134 : vector<16x1xf32>
    %136 = math.rsqrt %135 : vector<16x1xf32>
    %137 = vector.broadcast %136 : vector<16x1xf32> to vector<16x32xf32>
    %138 = arith.mulf %133, %137 : vector<16x32xf32>
    %139 = vector.broadcast %118 : vector<1x32xf32> to vector<16x32xf32>
    %140 = arith.mulf %138, %139 : vector<16x32xf32>
    %141 = vector.broadcast %120 : vector<1x32xf32> to vector<16x32xf32>
    %142 = arith.addf %140, %141 : vector<16x32xf32>
    %c0_61 = arith.constant 0 : index
    %c0_62 = arith.constant 0 : index
    %143 = vector.load %arg24[%c0_61, %c0_62] : memref<16x32xf32, #tpu.memory_space<vmem>>, vector<16x32xf32>
    tpu.vector_store %arg24[%c0_61, %c0_62], %142 {strides = array<i32>} : memref<16x32xf32, #tpu.memory_space<vmem>>, vector<16x32xf32>,
    %c1_i32 = arith.constant 1 : i32
    %144 = arith.cmpi eq, %arg0, %c1_i32 : i32
    %145 = arith.extui %144 : i1 to i32
    %c0_i32_63 = arith.constant 0 : i32
    %146 = arith.cmpi ne, %145, %c0_i32_63 : i32
    scf.if %146 {
      %147 = vector.extract_strided_slice %142 {offsets = [0, 0], sizes = [1, 32], strides = [1, 1]} : vector<16x32xf32> to vector<1x32xf32>
      %148 = vector.extract_strided_slice %142 {offsets = [8, 0], sizes = [1, 32], strides = [1, 1]} : vector<16x32xf32> to vector<1x32xf32>
      %149 = tpu.concatenate %147, %148 in 0 : vector<1x32xf32>, vector<1x32xf32> -> vector<2x32xf32>
      %c0_64 = arith.constant 0 : index
      %c0_65 = arith.constant 0 : index
      %150 = vector.load %arg21[%c0_64, %c0_65] : memref<32x128xf32, #tpu.memory_space<vmem>>, vector<32x128xf32>
      %cst_66 = arith.constant dense<0.000000e+00> : vector<2x128xf32>
      %151 = tpu.matmul %149, %150, %cst_66 {dimension_numbers = #tpu.dot_dimension_numbers<[1], [0], [0], [1], [0, 0, 1, 1], [], []>} : vector<2x32xf32>, vector<32x128xf32>, vector<2x128xf32> -> vector<2x128xf32>
      %c0_67 = arith.constant 0 : index
      %c0_68 = arith.constant 0 : index
      %152 = vector.load %arg22[%c0_67, %c0_68] : memref<1x128xf32, #tpu.memory_space<vmem>>, vector<1x128xf32>
      %153 = vector.broadcast %152 : vector<1x128xf32> to vector<2x128xf32>
      %154 = arith.addf %151, %153 : vector<2x128xf32>
      %c0_69 = arith.constant 0 : index
      %c0_70 = arith.constant 0 : index
      %155 = vector.load %arg23[%c0_69, %c0_70] : memref<2x128xf32, #tpu.memory_space<vmem>>, vector<2x128xf32>
      tpu.vector_store %arg23[%c0_69, %c0_70], %154 {strides = array<i32>} : memref<2x128xf32, #tpu.memory_space<vmem>>, vector<2x128xf32>,
    } else {
    }
    return
  }
  func.func @transform_0(%arg0: i32) -> (i32, i32) {
    %c0_i32 = arith.constant 0 : i32
    %c0_i32_0 = arith.constant 0 : i32
    %c0_i32_1 = arith.constant 0 : i32
    return %c0_i32, %c0_i32_0 : i32, i32
  }
  func.func @transform_1(%arg0: i32) -> (i32, i32) {
    %c0_i32 = arith.constant 0 : i32
    %c0_i32_0 = arith.constant 0 : i32
    %c0_i32_1 = arith.constant 0 : i32
    return %c0_i32, %c0_i32_0 : i32, i32
  }
  func.func @transform_2(%arg0: i32) -> (i32, i32) {
    %c0_i32 = arith.constant 0 : i32
    %c0_i32_0 = arith.constant 0 : i32
    %c0_i32_1 = arith.constant 0 : i32
    return %c0_i32, %c0_i32_0 : i32, i32
  }
  func.func @transform_3(%arg0: i32) -> (i32, i32) {
    %c0_i32 = arith.constant 0 : i32
    %c0_i32_0 = arith.constant 0 : i32
    %c0_i32_1 = arith.constant 0 : i32
    return %c0_i32, %c0_i32_0 : i32, i32
  }
  func.func @transform_4(%arg0: i32) -> (i32, i32) {
    %c0_i32 = arith.constant 0 : i32
    %c0_i32_0 = arith.constant 0 : i32
    %c0_i32_1 = arith.constant 0 : i32
    return %c0_i32, %c0_i32_0 : i32, i32
  }
  func.func @transform_5(%arg0: i32) -> (i32, i32) {
    %c0_i32 = arith.constant 0 : i32
    %c0_i32_0 = arith.constant 0 : i32
    %c0_i32_1 = arith.constant 0 : i32
    return %c0_i32, %c0_i32_0 : i32, i32
  }
  func.func @transform_6(%arg0: i32) -> (i32, i32) {
    %c0_i32 = arith.constant 0 : i32
    %c0_i32_0 = arith.constant 0 : i32
    %c0_i32_1 = arith.constant 0 : i32
    return %c0_i32, %c0_i32_0 : i32, i32
  }
  func.func @transform_7(%arg0: i32) -> (i32, i32) {
    %c0_i32 = arith.constant 0 : i32
    %c0_i32_0 = arith.constant 0 : i32
    %c0_i32_1 = arith.constant 0 : i32
    return %c0_i32, %c0_i32_0 : i32, i32
  }
  func.func @transform_8(%arg0: i32) -> (i32, i32, i32) {
    %c0_i32 = arith.constant 0 : i32
    %c0_i32_0 = arith.constant 0 : i32
    %c0_i32_1 = arith.constant 0 : i32
    return %arg0, %c0_i32, %c0_i32_0 : i32, i32, i32
  }
  func.func @transform_9(%arg0: i32) -> (i32, i32, i32) {
    %c0_i32 = arith.constant 0 : i32
    %c0_i32_0 = arith.constant 0 : i32
    %c0_i32_1 = arith.constant 0 : i32
    return %arg0, %c0_i32, %c0_i32_0 : i32, i32, i32
  }
  func.func @transform_10(%arg0: i32) -> (i32, i32, i32) {
    %c0_i32 = arith.constant 0 : i32
    %c0_i32_0 = arith.constant 0 : i32
    %c0_i32_1 = arith.constant 0 : i32
    return %arg0, %c0_i32, %c0_i32_0 : i32, i32, i32
  }
  func.func @transform_11(%arg0: i32) -> (i32, i32, i32) {
    %c0_i32 = arith.constant 0 : i32
    %c0_i32_0 = arith.constant 0 : i32
    %c0_i32_1 = arith.constant 0 : i32
    return %arg0, %c0_i32, %c0_i32_0 : i32, i32, i32
  }
  func.func @transform_12(%arg0: i32) -> (i32, i32, i32) {
    %c0_i32 = arith.constant 0 : i32
    %c0_i32_0 = arith.constant 0 : i32
    %c0_i32_1 = arith.constant 0 : i32
    return %arg0, %c0_i32, %c0_i32_0 : i32, i32, i32
  }
  func.func @transform_13(%arg0: i32) -> (i32, i32, i32) {
    %c0_i32 = arith.constant 0 : i32
    %c0_i32_0 = arith.constant 0 : i32
    %c0_i32_1 = arith.constant 0 : i32
    return %arg0, %c0_i32, %c0_i32_0 : i32, i32, i32
  }
  func.func @transform_14(%arg0: i32) -> (i32, i32, i32) {
    %c0_i32 = arith.constant 0 : i32
    %c0_i32_0 = arith.constant 0 : i32
    %c0_i32_1 = arith.constant 0 : i32
    return %arg0, %c0_i32, %c0_i32_0 : i32, i32, i32
  }
  func.func @transform_15(%arg0: i32) -> (i32, i32, i32) {
    %c0_i32 = arith.constant 0 : i32
    %c0_i32_0 = arith.constant 0 : i32
    %c0_i32_1 = arith.constant 0 : i32
    return %arg0, %c0_i32, %c0_i32_0 : i32, i32, i32
  }
  func.func @transform_16(%arg0: i32) -> (i32, i32, i32) {
    %c0_i32 = arith.constant 0 : i32
    %c0_i32_0 = arith.constant 0 : i32
    %c0_i32_1 = arith.constant 0 : i32
    return %arg0, %c0_i32, %c0_i32_0 : i32, i32, i32
  }
  func.func @transform_17(%arg0: i32) -> (i32, i32, i32) {
    %c0_i32 = arith.constant 0 : i32
    %c0_i32_0 = arith.constant 0 : i32
    %c0_i32_1 = arith.constant 0 : i32
    return %arg0, %c0_i32, %c0_i32_0 : i32, i32, i32
  }
  func.func @transform_18(%arg0: i32) -> (i32, i32, i32) {
    %c0_i32 = arith.constant 0 : i32
    %c0_i32_0 = arith.constant 0 : i32
    %c0_i32_1 = arith.constant 0 : i32
    return %arg0, %c0_i32, %c0_i32_0 : i32, i32, i32
  }
  func.func @transform_19(%arg0: i32) -> (i32, i32, i32) {
    %c0_i32 = arith.constant 0 : i32
    %c0_i32_0 = arith.constant 0 : i32
    %c0_i32_1 = arith.constant 0 : i32
    return %arg0, %c0_i32, %c0_i32_0 : i32, i32, i32
  }
  func.func @transform_20(%arg0: i32) -> (i32, i32) {
    %c0_i32 = arith.constant 0 : i32
    %c0_i32_0 = arith.constant 0 : i32
    %c0_i32_1 = arith.constant 0 : i32
    return %c0_i32, %c0_i32_0 : i32, i32
  }
  func.func @transform_21(%arg0: i32) -> (i32, i32) {
    %c0_i32 = arith.constant 0 : i32
    %c0_i32_0 = arith.constant 0 : i32
    %c0_i32_1 = arith.constant 0 : i32
    return %c0_i32, %c0_i32_0 : i32, i32
  }
  func.func @transform_22(%arg0: i32) -> (i32, i32) {
    %c0_i32 = arith.constant 0 : i32
    %c0_i32_0 = arith.constant 0 : i32
    %c0_i32_1 = arith.constant 0 : i32
    return %c0_i32, %c0_i32_0 : i32, i32
  }
}

</mosaic_0001>

<bundles_post_ra>
// kernel: roberta_classifier_forward.1
= control target key start
LH: loop header
LB: loop body
LE: loop exit
PB: predicated region body
PF: predicated region fallthrough
CT: control target
= control target key end

     0   :  { %s3223_s0 = inlined_call_operand.vmem [shape: s32[16,1], index: 0, kind: input, shape index: {}]   ;;  %s3224_s1 = inlined_call_operand.vmem [shape: s32[16,1], index: 1, kind: input, shape index: {}]   ;;  %s3225_s2 = inlined_call_operand.vmem [shape: f32[2,8], index: 2, kind: input, shape index: {}]   ;;  %s3226_s3 = inlined_call_operand.vmem [shape: f32[100,32], index: 3, kind: input, shape index: {}]   ;;  %s3227_s4 = inlined_call_operand.vmem [shape: f32[16,32], index: 4, kind: input, shape index: {}]   ;;  %s3228_s5 = inlined_call_operand.vmem [shape: f32[2,32], index: 5, kind: input, shape index: {}]   ;;  %s3229_s6 = inlined_call_operand.vmem [shape: f32[1,32], index: 6, kind: input, shape index: {}]   ;;  %s3230_s7 = inlined_call_operand.vmem [shape: f32[1,32], index: 7, kind: input, shape index: {}]   ;;  %s3231_s8 = inlined_call_operand.vmem [shape: bf16[2,32,96], index: 8, kind: input, shape index: {}]   ;;  %s3232_s9 = inlined_call_operand.vmem [shape: f32[2,1,96], index: 9, kind: input, shape index: {}]   ;;  %s3233_s10 = inlined_call_operand.vmem [shape: bf16[2,32,32], index: 10, kind: input, shape index: {}]   ;;  %s3234_s11 = inlined_call_operand.vmem [shape: f32[2,1,32], index: 11, kind: input, shape index: {}]   ;;  %s3235_s12 = inlined_call_operand.vmem [shape: f32[2,1,32], index: 12, kind: input, shape index: {}]   ;;  %s3236_s13 = inlined_call_operand.vmem [shape: f32[2,1,32], index: 13, kind: input, shape index: {}]   ;;  %s3237_s14 = inlined_call_operand.vmem [shape: bf16[2,32,64], index: 14, kind: input, shape index: {}]   ;;  %s3238_s15 = inlined_call_operand.vmem [shape: f32[2,1,64], index: 15, kind: input, shape index: {}]   ;;  %s3239_s16 = inlined_call_operand.vmem [shape: bf16[2,64,32], index: 16, kind: input, shape index: {}]   ;;  %s3240_s17 = inlined_call_operand.vmem [shape: f32[2,1,32], index: 17, kind: input, shape index: {}]   ;;  %s3241_s18 = inlined_call_operand.vmem [shape: f32[2,1,32], index: 18, kind: input, shape index: {}]   ;;  %s3242_s19 = inlined_call_operand.vmem [shape: f32[2,1,32], index: 19, kind: input, shape index: {}]   ;;  %s3243_s20 = inlined_call_operand.vmem [shape: f32[32,128], index: 20, kind: input, shape index: {}]   ;;  %s3244_s21 = inlined_call_operand.vmem [shape: f32[1,128], index: 21, kind: input, shape index: {}]   ;;  %s3245_s22 = inlined_call_operand.vmem [shape: f32[2,128], index: 22, kind: output, shape index: {}]  }
   0x1   :  { %3253 = sst [smem:[#allocation5_spill]] %s3223_s0 }
   0x2   :  { %3254 = sst [smem:[#allocation6_spill]] %s3224_s1 }
   0x3   :  { %3255 = sst [smem:[#allocation7_spill]] %s3225_s2 }
   0x4   :  { %3256 = sst [smem:[#allocation8_spill]] %s3226_s3  ;;  %s2901_s3 = smov 0  }
   0x5   :  { %3257 = sst [smem:[#allocation9_spill]] %s3227_s4 }
   0x6   :  { %3258 = sst [smem:[#allocation10_spill]] %s3228_s5 }
   0x7   :  { %3259 = sst [smem:[#allocation11_spill]] %s3229_s6 }
   0x8   :  { %3260 = sst [smem:[#allocation12_spill]] %s3231_s8 }
   0x9   :  { %3261 = sst [smem:[#allocation13_spill]] %s3233_s10 }
   0xa   :  { %3262 = sst [smem:[#allocation14_spill]] %s3243_s20 }
   0xb   :  { %3263 = sst [smem:[#allocation15_spill]] %s3244_s21 }
   0xc   :  { %3264 = sst [smem:[#allocation16_spill]] %s3245_s22 }
   0xd LB: > { %3265 = sst [smem:[#allocation3_spill]] %s2773_s3  ;;  %s2907_s28 = sadd.s32 4294967295, %s2773_s3   ;;  %s2773_s3 = sphi %s2901_s3, %s32_s3  }
   0xe   : > { %p2456_p0 = scmp.ge.s32.totalorder %s2773_s3, 1  ;;  %p701_p1 = scmp.lt.s32.totalorder %s2773_s3, 3 }
  0x10   : > { %p702_p2 = pnand %p2456_p0, %p701_p1 }
  0x12   : > { %705 = sbr.rel (%p702_p2) target bundleno = 3398 (0xd46), region = 108 }
  0x17   : > { %p797_p3 = scmp.lt.s32.totalorder %s2907_s28, 1  ;;  %s3266_s8 = sld [smem:[#allocation12_spill]] }
  0x18   : > { %s3267_s10 = sld [smem:[#allocation13_spill]]  ;;  %p2465_p4 = scmp.ne.s32.totalorder %s2907_s28, 0 }
  0x19   : > { %s2913_s29 = scalar_select %p797_p3, %s2907_s28, 1 }
  0x1a   : > { %s3269_s2 = sld [smem:[#allocation5_spill]] (!%p2465_p4) }
  0x1b   : > { %s2518_s30 = sshll.u32 %s2913_s29, 4  ;;  %s3270_s22 = sld [smem:[#allocation8_spill]] (!%p2465_p4) }
  0x1c   : > { %845 = sbr.rel (%p2465_p4) target bundleno = 678 (0x2a6), region = 112  ;;  %s3271_s25 = sld [smem:[#allocation6_spill]] (!%p2465_p4) }
  0x1d   : > { %s2923_s24 = scalar_lea.vmem %s3266_s8, %s2518_s30  ;;  %s2945_s8 = scalar_lea.vmem %s3237_s14, %s2518_s30 }
  0x1e   : > { %s2928_s26 = scalar_lea.vmem %s3267_s10, %s2518_s30  ;;  %s826_s10 = scalar_lea.vmem %s3238_s15, %s2913_s29 }
  0x1f   : > { %3268 = sst [smem:[#allocation4_spill]] %s2928_s26  ;;  %s2521_s26 = sshll.u32 %s2913_s29, 5 }
  0x20   : > { %s2955_s3 = scalar_lea.vmem %s3239_s16, %s2521_s26  ;;  %s3272_s4 = sld [smem:[#allocation9_spill]] (!%p2465_p4) }
  0x21   : > { %v849_v0 = vld [vmem:[%s3269_s2 + $0x8] sm:$0xff]  ;;  %v848_v1 = vld [vmem:[%s3269_s2] sm:$0xff]  ;;  %vm980_vm0 = vcmask 1043456   ;;  %v2775_v2 = vmov 0   ;;  %v887_v4 = vld [vmem:[%s3270_s22 + $0x58] sm:$0xff]  ;;  %v846_v20 = vlaneseq  ;;  %vm973_vm1 = vcmask 818176  }
  0x22   : > { %2719 = vset.pattern.permute.xlu1 %v2775_v2  ;;  %2718 = vset.pattern.permute.xlu0 %v2775_v2  ;;  %v888_v3 = vld [vmem:[%s3270_s22 + $0x60] sm:$0xf]  ;;  %v863_v5 = vld [vmem:[%s3271_s25 + $0x8] sm:$0xff]  ;;  %v886_v7 = vld [vmem:[%s3270_s22 + $0x50] sm:$0xff]  ;;  %v2776_v24 = vmov 0.0   ;;  %vm891_vm4 = vcmask 130048  }
  0x23   : > { %854 = vperm.xlu1 %2719, %v849_v0   ;;  %851 = vperm.xlu0 %2718, %v848_v1   ;;  %v862_v6 = vld [vmem:[%s3271_s25] sm:$0xff]  ;;  %v885_v10 = vld [vmem:[%s3270_s22 + $0x48] sm:$0xff]  ;;  %v883_v12 = vld [vmem:[%s3270_s22 + $0x38] sm:$0xff]  ;;  %v847_v21 = vand.u32 127, %v846_v20  ;;  %s3273_s20 = sld [smem:[#allocation10_spill]]  ;;  %vm1068_vm7 = vcmask 261120  }
  0x24   : > { %2583 = vmatprep.subr.msk.mxu1 %vm980_vm0, %v888_v3  ;;  %v884_v11 = vld [vmem:[%s3270_s22 + $0x40] sm:$0xff]  ;;  %v882_v13 = vld [vmem:[%s3270_s22 + $0x30] sm:$0xff]  ;;  %v881_v14 = vld [vmem:[%s3270_s22 + $0x28] sm:$0xff]  ;;  %s3274_s27 = sld [smem:[#allocation11_spill]] }
  0x25   : > { %2584 = vmatpush3.msk.msra.mxu1 %vm980_vm0, %v888_v3  ;;  %v880_v15 = vld [vmem:[%s3270_s22 + $0x20] sm:$0xff]  ;;  %v879_v16 = vld [vmem:[%s3270_s22 + $0x18] sm:$0xff]  ;;  %v878_v17 = vld [vmem:[%s3270_s22 + $0x10] sm:$0xff] }
  0x26   : > { %2585 = vmatprep.subr.mxu1 %v887_v4  ;;  %v890_v8 = vld [vmem:[%s3272_s4 + $0x8] sm:$0xff]  ;;  %v889_v9 = vld [vmem:[%s3272_s4] sm:$0xff] }
  0x27   : > { %868 = vperm.xlu1 %2719, %v863_v5   ;;  %865 = vperm.xlu0 %2718, %v862_v6   ;;  %v877_v18 = vld [vmem:[%s3270_s22 + $0x8] sm:$0xff]  ;;  %v876_v19 = vld [vmem:[%s3270_s22] sm:$0xff] }
  0x28   : > { %2586 = vmatpush3.msra.mxu1 %v887_v4  ;;  %2576 = vmatprep.subr.mxu0 %v890_v8  ;;  %v2477_v61 = vld [vmem:[%s3230_s7] ss:$0 sm:$0xff] }
  0x29   : > { %2587 = vmatprep.subr.mxu1 %v886_v7  ;;  %2577 = vmatpush3.msra.mxu0 %v890_v8  ;;  %v2475_v33 = vld [vmem:[%s3273_s20] ss:$0 sm:$0xff] }
  0x2a   : > { %2588 = vmatpush3.msra.mxu1 %v886_v7  ;;  %2578 = vmatprep.subr.mxu0 %v889_v9  ;;  %v2476_v59 = vld [vmem:[%s3274_s27] ss:$0 sm:$0xff] }
  0x2b   : > { %2589 = vmatprep.subr.mxu1 %v885_v10  ;;  %2579 = vmatpush3.msra.mxu0 %v889_v9 }
  0x2c   : > { %2590 = vmatpush3.msra.mxu1 %v885_v10 }
  0x2d   : > { %2591 = vmatprep.subr.mxu1 %v884_v11 }
  0x2e   : > { %2592 = vmatpush3.msra.mxu1 %v884_v11 }
  0x2f   : > { %2593 = vmatprep.subr.mxu1 %v883_v12 }
  0x30   : > { %2594 = vmatpush3.msra.mxu1 %v883_v12 }
  0x31   : > { %2595 = vmatprep.subr.mxu1 %v882_v13 }
  0x32   : > { %2596 = vmatpush3.msra.mxu1 %v882_v13 }
  0x33   : > { %2597 = vmatprep.subr.mxu1 %v881_v14 }
  0x34   : > { %2598 = vmatpush3.msra.mxu1 %v881_v14 }
  0x35   : > { %2599 = vmatprep.subr.mxu1 %v880_v15 }
  0x36   : > { %2600 = vmatpush3.msra.mxu1 %v880_v15 }
  0x37   : > { %2601 = vmatprep.subr.mxu1 %v879_v16 }
  0x38   : > { %2602 = vmatpush3.msra.mxu1 %v879_v16 }
  0x39   : > { %2603 = vmatprep.subr.mxu1 %v878_v17 }
  0x3a   : > { %2604 = vmatpush3.msra.mxu1 %v878_v17 }
  0x3b   : > { %2605 = vmatprep.subr.mxu1 %v877_v18 }
  0x3c   : > { %2606 = vmatpush3.msra.mxu1 %v877_v18 }
  0x3d   : > { %2607 = vmatprep.subr.mxu1 %v876_v19 }
  0x3e   : > { %2608 = vmatpush3.msra.mxu1 %v876_v19 }
  0x9e   : > { %v855_v22 = vpop.permute.xlu1 %854  ;;  %v852_v23 = vpop.permute.xlu0 %851 }
  0x9f   : > { %vm857_vm2 = vcmp.eq.s32.totalorder %v847_v21, %v855_v22  ;;  %vm856_vm3 = vcmp.eq.s32.totalorder %v847_v21, %v852_v23 }
  0xa0   : > { %v2467_v25 = vsel %vm857_vm2, 1.0, %v2776_v24  ;;  %v2466_v26 = vsel %vm856_vm3, 1.0, %v2776_v24 }
  0xa1   : > { %2609 = vmatprep.mubr.msk.f32.mxu1 %vm973_vm1, %v2466_v26 }
  0xa2   : > { %v869_v27 = vpop.permute.xlu1 %868  ;;  %v866_v28 = vpop.permute.xlu0 %865  ;;  %2610 = vmatmul.mubr.msk.f32.vlgmr.msra.gmra.mxu1 %vm973_vm1, %v2467_v25 }
  0xa3   : > { %vm871_vm5 = vcmp.eq.s32.totalorder %v847_v21, %v869_v27  ;;  %vm870_vm6 = vcmp.eq.s32.totalorder %v847_v21, %v866_v28 }
  0xa4   : > { %v2469_v29 = vsel %vm871_vm5, 1.0, %v2776_v24  ;;  %v2468_v30 = vsel %vm870_vm6, 1.0, %v2776_v24 }
  0xa5   : > { %2580 = vmatprep.mubr.msk.f32.mxu0 %vm891_vm4, %v2468_v30 }
  0xa6   : > { %2581 = vmatmul.mubr.msk.f32.vlgmr.msra.gmra.mxu0 %vm891_vm4, %v2469_v29 }
 0x162   : > { %v2611_v31 = vpop.f32.mrf.mxu1 }
 0x164   : > { %v1050_v35 = vpop.f32.mrf.mxu1 }
 0x166   : > { %v2582_v32 = vpop.f32.mrf.mxu0 }
 0x167   : > { %v1056_v34 = vadd.f32 %v2611_v31, %v2582_v32 }
 0x168   : > { %v964_v36 = vpop.f32.mrf.mxu0 }
 0x169   : > { %v1051_v37 = vadd.f32 %v1050_v35, %v964_v36  ;;  %v1065_v38 = vadd.f32 %v2475_v33, %v1056_v34 }
 0x16b   : > { %v1072_v39 = vsel %vm1068_vm7, %v1065_v38, 0.0  ;;  %v1064_v40 = vadd.f32 %v2475_v33, %v1051_v37 }
 0x16c   : > { %1073 = vadd.xlane.f32.xlu1 %v1072_v39 }
 0x16d   : > { %v1069_v41 = vsel %vm1068_vm7, %v1064_v40, 0.0 }
 0x16e   : > { %1070 = vadd.xlane.f32.xlu0 %v1069_v41 }
 0x1f5   : > { %v1074_v42 = vpop.xlane.xlu1 %1073 }
 0x1f6   : > { %v1077_v43 = vmul.f32 0.03125, %v1074_v42 }
 0x1f7   : > { %v1071_v44 = vpop.xlane.xlu0 %1070 }
 0x1f8   : > { %v1076_v45 = vmul.f32 0.03125, %v1071_v44  ;;  %v1079_v46 = vsub.f32 %v1065_v38, %v1077_v43 }
 0x1fa   : > { %v1078_v47 = vsub.f32 %v1064_v40, %v1076_v45  ;;  %v1081_v50 = vmul.f32 %v1079_v46, %v1079_v46 }
 0x1fc   : > { %v1080_v48 = vmul.f32 %v1078_v47, %v1078_v47  ;;  %v1085_v51 = vsel %vm1068_vm7, %v1081_v50, 0.0 }
 0x1fe   : > { %v1082_v49 = vsel %vm1068_vm7, %v1080_v48, 0.0 }
 0x1ff   : > { %1083 = vadd.xlane.f32.xlu0 %v1082_v49 }
 0x203   : > { %1086 = vadd.xlane.f32.xlu0 %v1085_v51 }
 0x288   : > { %v1084_v52 = vpop.xlane.xlu0 %1083 }
 0x289   : > { %v1088_v53 = vmul.f32 0.03125, %v1084_v52 }
 0x28b   : > { %v1090_v54 = vadd.f32 1e-05, %v1088_v53 }
 0x28c   : > { %v1087_v55 = vpop.xlane.xlu0 %1086 }
 0x28d   : > { %2720 = vrsqrt.f32 %v1090_v54  ;;  %v1089_v56 = vmul.f32 0.03125, %v1087_v55 }
 0x28f   : > { %v1091_v57 = vadd.f32 1e-05, %v1089_v56 }
 0x291   : > { %2722 = vrsqrt.f32 %v1091_v57 }
 0x29a   : > { %v2721_v58 = vpop.eup %2720 }
 0x29b   : > { %v1094_v60 = vmul.f32 %v2721_v58, %v1078_v47 }
 0x29d   : > { %v1102_v62 = vmul.f32 %v2476_v59, %v1094_v60 }
 0x29e   : > { %v2723_v63 = vpop.eup %2722 }
 0x29f   : > { %v1110_v0 = vadd.f32 %v2477_v61, %v1102_v62  ;;  %v1095_v1 = vmul.f32 %v2723_v63, %v1079_v46 }
 0x2a1   : > { %1112 = vst.msk [vmem:[#allocation2] sm:$0xff] %vm1068_vm7, %v1110_v0  ;;  %v1103_v2 = vmul.f32 %v2476_v59, %v1095_v1 }
 0x2a3   : > { %v1111_v3 = vadd.f32 %v2477_v61, %v1103_v2 }
 0x2a5   : > { %1113 = vst.msk [vmem:[#allocation2 + $0x8] sm:$0xff] %vm1068_vm7, %v1111_v3 }
 0x2a6 PF: > { %v2729_v4 = vld [vmem:[%s2923_s24 + $0x8] sm:$0xff]   ;;  %v2777_v5 = vmov 0.0   ;;  %v2730_v6 = vld [vmem:[%s2923_s24] sm:$0xff]   ;;  %vm2778_vm8 = vmmov 0   ;;  %vm1140_vm9 = vcmask 261120   ;;  %s3275_s30 = scalar_lea.vmem %s3232_s9, %s2913_s29  ;;  %s2779_s5 = smov 96   ;;  %v1204_v25 = vlaneseq }
 0x2a7   : > { %2612 = vmatprep.subr.bf16.mxu0 %v2777_v5  ;;  %2625 = vmatprep.subr.mxu1 %v2777_v5  ;;  %v2478_v10 = vld [vmem:[%s3275_s30] ss:$0 sm:$0xff]  ;;  %s2780_s6 = smov 112   ;;  %vm1227_vm10 = vcmask 130048   ;;  %v2781_v23 = vmov 1966171168   ;;  %s3278_s30 = scalar_lea.vmem %s3234_s11, %s2913_s29 }
 0x2a8   : > { %2613 = vmatpush3.bf16.msra.mxu0 %v2729_v4  ;;  %2616 = vmatprep.mubr.msk.bf16.mxu0 %vm2778_vm8, %v2777_v5  ;;  %v3048_v7 = vld [vmem:[#allocation2] sm:$0xff]  ;;  %v1202_v24 = vunpack.c.l.s4 %v2781_v23  ;;  %v1205_v27 = vshrl.u32 %v1204_v25, 7  ;;  %s3276_s1 = sld [smem:[#allocation7_spill]]  ;;  %vm1530_vm11 = vcmask 64512   ;;  %s2782_s27 = smov 64   ;;  %vm2130_vm12 = vcmask 523264  }
 0x2a9   : > { %2614 = vmatprep.subr.bf16.mxu0 %v2777_v5  ;;  %2627 = vmatprep.mubr.msk.f32.mxu1 %vm2778_vm8, %v2777_v5  ;;  %s3277_s23 = sld [smem:[#allocation4_spill]]  ;;  %s2783_s21 = smov 16  }
 0x2aa   : > { %v1203_v26 = vunpack.c.0.s8 %v1202_v24  ;;  %v1217_v31 = vsub.s32 0, %v1205_v27  ;;  %p2513_p5 = scmp.ne.s32.totalorder %s2907_s28, 1 }
 0x2ab   : > { %s3285_s0 = sld [smem:[#allocation15_spill]] (!%p2513_p5) }
 0x2ac   : > { %v3050_v8 = vld [vmem:[#allocation2 + $0x8] sm:$0xff]  ;;  %2615 = vmatpush3.bf16.msra.mxu0 %v2730_v6  ;;  %v1206_v28 = vsub.s32 %v1203_v26, %v1205_v27 }
 0x2ad   : > { %v1116_v9 = vpack.c.bf16 %v3050_v8, %v3048_v7  ;;  %2620 = vmatprep.subr.mxu0 %v2777_v5 }
 0x2ae   : > { %v2482_v29 = vld.sshfl [vmem:[%s3276_s1] sm:$0x11 pattern:$0x75316420]  ;;  %s3280_s1 = scalar_lea.vmem %s3236_s13, %s2913_s29 }
 0x2af   : > { %2617 = vmatmul.mubr.msk.bf16.vlgmr.msra.gmra.mxu0 %vm1140_vm9, %v1116_v9  ;;  %v1207_v30 = vrot.slane %v2482_v29, %v1206_v28  ;;  %v1200_v32 = vcombine.high %v2482_v29, %v2482_v29  ;;  %v2731_v27 = vld [vmem:[%s3277_s23 + $0x8] sm:$0xff]  }
 0x2b0   : > { %2622 = vmatprep.mubr.msk.f32.mxu0 %vm2778_vm8, %v2777_v5 }
 0x2b1   : > { %v1218_v33 = vrot.slane %v1207_v30, %v1217_v31  ;;  %v1214_v34 = vrot.slane %v1200_v32, %v1206_v28 }
 0x2b3   : > { %v1222_v37 = vrot.slane %v1214_v34, %v1217_v31  ;;  %v2732_v31 = vld [vmem:[%s3277_s23] sm:$0xff]  }
 0x36f   : > { %v1178_v11 = vpop.f32.mrf.mxu0 }
 0x370   : > { %v1179_v12 = vadd.f32 %v2478_v10, %v1178_v11 }
 0x371   : > { %v2618_v13 = vpop.f32.mrf.mxu0 }
 0x372   : > { %1225 = vrot.lane.b32.xlu1 %v1179_v12, %s2779_s5  ;;  %1187 = vrot.lane.b32.xlu0 %v1179_v12, %s2780_s6 }
 0x373   : > { %v1181_v14 = vpop.f32.mrf.mxu0 }
 0x374   : > { %v3066_v15 = vadd.f32 %v2478_v10, %v1181_v14 }
 0x375   : > { %v2619_v16 = vpop.f32.mrf.mxu0 }
 0x376   : > { %1302 = vrot.lane.b32.xlu1 %v3066_v15, %s2779_s5  ;;  %1189 = vrot.lane.b32.xlu0 %v3066_v15, %s2780_s6  ;;  %s3286_s6 = sld [smem:[#allocation16_spill]] (!%p2513_p5) }
 0x3e4   : > { %v1226_v17 = vpop.permute.xlu1 %1225  ;;  %v3070_v18 = vpop.permute.xlu0 %1187 }
 0x3e5   : > { %2621 = vmatpush3.xpose.msk.msra.mxu0 %vm1227_vm10, %v1226_v17  ;;  %1378 = vrot.lane.b32.xlu0 %v3070_v18, %s2779_s5 }
 0x3e6   : > { %2635 = vmatprep.subr.mxu0 %v2777_v5 }
 0x3e8   : > { %2623 = vmatmul.mubr.msk.f32.vlgmr.msra.gmra.mxu0 %vm1227_vm10, %v1179_v12  ;;  %v1303_v19 = vpop.permute.xlu1 %1302  ;;  %v3076_v20 = vpop.permute.xlu0 %1189 }
 0x3e9   : > { %2626 = vmatpush3.xpose.msk.msra.mxu1 %vm1227_vm10, %v1303_v19  ;;  %1454 = vrot.lane.b32.xlu1 %v3076_v20, %s2779_s5 }
 0x3ea   : > { %2630 = vmatprep.subr.mxu1 %v2777_v5  ;;  %2637 = vmatprep.mubr.msk.f32.mxu0 %vm2778_vm8, %v2777_v5 }
 0x3ec   : > { %2628 = vmatmul.mubr.msk.f32.vlgmr.msra.gmra.mxu1 %vm1227_vm10, %v3066_v15 }
 0x3ed   : > { %2632 = vmatprep.mubr.msk.f32.mxu1 %vm2778_vm8, %v2777_v5 }
 0x457   : > { %v1379_v21 = vpop.permute.xlu0 %1378 }
 0x458   : > { %2631 = vmatpush3.xpose.msk.msra.mxu1 %vm1227_vm10, %v1379_v21 }
 0x459   : > { %2640 = vmatprep.subr.mxu1 %v2777_v5 }
 0x45b   : > { %v1455_v22 = vpop.permute.xlu1 %1454  ;;  %2633 = vmatmul.mubr.msk.f32.vlgmr.msra.gmra.mxu1 %vm1227_vm10, %v3070_v18 }
 0x45c   : > { %2636 = vmatpush3.xpose.msk.msra.mxu0 %vm1227_vm10, %v1455_v22  ;;  %2642 = vmatprep.mubr.msk.f32.mxu1 %vm2778_vm8, %v2777_v5 }
 0x45d   : > { %2645 = vmatprep.subr.mxu0 %v2777_v5 }
 0x45f   : > { %2638 = vmatmul.mubr.msk.f32.vlgmr.msra.gmra.mxu0 %vm1227_vm10, %v3076_v20 }
 0x460   : > { %2647 = vmatprep.mubr.msk.f32.mxu0 %vm2778_vm8, %v2777_v5 }
 0x4a8   : > { %v1298_v35 = vpop.f32.mrf.mxu0 }
 0x4a9   : > { %v1299_v36 = vadd.f32 %v1298_v35, %v1218_v33 }
 0x4aa   : > { %v2624_v38 = vpop.f32.mrf.mxu0 }
 0x4ab   : > { %v1531_v39 = vsel %vm1530_vm11, %v1299_v36, -inf }
 0x4ac   : > { %v1374_v40 = vpop.f32.mrf.mxu1  ;;  %1532 = vmax.xlane.f32.xlu0 %v1531_v39 }
 0x4ad   : > { %v1375_v41 = vadd.f32 %v1374_v40, %v1222_v37 }
 0x4ae   : > { %v2629_v42 = vpop.f32.mrf.mxu1 }
 0x4af   : > { %v1534_v43 = vsel %vm1530_vm11, %v1375_v41, -inf }
 0x4b0   : > { %1535 = vmax.xlane.f32.xlu1 %v1534_v43 }
 0x4c1   : > { %1575 = vrot.lane.b32.xlu1 %v1179_v12, %s2782_s27 }
 0x51b   : > { %v1450_v44 = vpop.f32.mrf.mxu1 }
 0x51c   : > { %v1451_v45 = vadd.f32 %v1450_v44, %v1218_v33  ;;  %v2495_v44 = vld [vmem:[%s3278_s30] ss:$0 sm:$0xff]  ;;  %s3282_s30 = scalar_lea.vmem %s3241_s18, %s2913_s29 }
 0x51d   : > { %v2634_v46 = vpop.f32.mrf.mxu1 }
 0x51e   : > { %v1537_v47 = vsel %vm1530_vm11, %v1451_v45, -inf }
 0x51f   : > { %1538 = vmax.xlane.f32.xlu0 %v1537_v47  ;;  %v1526_v48 = vpop.f32.mrf.mxu0 }
 0x520   : > { %v1527_v49 = vadd.f32 %v1526_v48, %v1222_v37 }
 0x521   : > { %v2639_v50 = vpop.f32.mrf.mxu0 }
 0x522   : > { %v1540_v51 = vsel %vm1530_vm11, %v1527_v49, -inf }
 0x523   : > { %1541 = vmax.xlane.f32.xlu0 %v1540_v51 }
 0x535   : > { %v1533_v52 = vpop.xlane.xlu0 %1532 }
 0x536   : > { %v1543_v53 = vsub.f32 %v1299_v36, %v1533_v52 }
 0x538   : > { %v1547_v54 = vmul.f32 1.442695, %v1543_v53 }
 0x539   : > { %v1536_v55 = vpop.xlane.xlu1 %1535 }
 0x53a   : > { %2739 = vpow2.f32 %v1547_v54  ;;  %v1544_v56 = vsub.f32 %v1375_v41, %v1536_v55 }
 0x53c   : > { %v1549_v57 = vmul.f32 1.442695, %v1544_v56 }
 0x53d   : > { %v1576_v58 = vpop.permute.xlu1 %1575 }
 0x53e   : > { %2741 = vpow2.f32 %v1549_v57  ;;  %2641 = vmatpush3.msra.mxu1 %v1576_v58 }
 0x53f   : > { %2650 = vmatprep.subr.mxu1 %v2777_v5 }
 0x547   : > { %v2740_v59 = vpop.eup %2739 }
 0x548   : > { %v1555_v60 = vsel %vm1530_vm11, %v2740_v59, 0.0 }
 0x549   : > { %1556 = vadd.xlane.f32.xlu1 %v1555_v60 }
 0x54b   : > { %v2742_v61 = vpop.eup %2741 }
 0x54c   : > { %v1558_v62 = vsel %vm1530_vm11, %v2742_v61, 0.0 }
 0x54d   : > { %1559 = vadd.xlane.f32.xlu0 %v1558_v62 }
 0x5a8   : > { %v1539_v63 = vpop.xlane.xlu0 %1538 }
 0x5a9   : > { %v1545_v0 = vsub.f32 %v1451_v45, %v1539_v63 }
 0x5ab   : > { %v1551_v1 = vmul.f32 1.442695, %v1545_v0  ;;  %v2734_v0 = vld [vmem:[%s2945_s8] sm:$0xff]  }
 0x5ac   : > { %v1542_v2 = vpop.xlane.xlu0 %1541 }
 0x5ad   : > { %2743 = vpow2.f32 %v1551_v1  ;;  %v1546_v3 = vsub.f32 %v1527_v49, %v1542_v2 }
 0x5af   : > { %v1553_v4 = vmul.f32 1.442695, %v1546_v3 }
 0x5b1   : > { %2745 = vpow2.f32 %v1553_v4 }
 0x5ba   : > { %v2744_v6 = vpop.eup %2743 }
 0x5bb   : > { %v1561_v9 = vsel %vm1530_vm11, %v2744_v6, 0.0 }
 0x5bc   : > { %1562 = vadd.xlane.f32.xlu1 %v1561_v9 }
 0x5be   : > { %v2746_v10 = vpop.eup %2745 }
 0x5bf   : > { %v1564_v11 = vsel %vm1530_vm11, %v2746_v10, 0.0 }
 0x5c0   : > { %1565 = vadd.xlane.f32.xlu0 %v1564_v11 }
 0x5cd   : > { %1727 = vrot.lane.b32.xlu1 %v3070_v18, %s2782_s27 }
 0x5d1   : > { %1803 = vrot.lane.b32.xlu1 %v3076_v20, %s2782_s27 }
 0x5d2   : > { %v1557_v12 = vpop.xlane.xlu1 %1556 }
 0x5d3   : > { %2747 = vrcp.f32 %v1557_v12 }
 0x5d6   : > { %1651 = vrot.lane.b32.xlu0 %v3066_v15, %s2782_s27  ;;  %v1560_v16 = vpop.xlane.xlu0 %1559 }
 0x5d7   : > { %2749 = vrcp.f32 %v1560_v16 }
 0x5e0   : > { %v2748_v13 = vpop.eup %2747 }
 0x5e1   : > { %v1571_v14 = vmul.f32 %v2748_v13, %v2740_v59 }
 0x5e3   : > { %2643 = vmatmul.mubr.msk.f32.vlgmr.msra.gmra.mxu1 %vm1530_vm11, %v1571_v14 }
 0x5e4   : > { %2652 = vmatprep.mubr.msk.f32.mxu1 %vm2778_vm8, %v2777_v5  ;;  %v2750_v21 = vpop.eup %2749 }
 0x5e5   : > { %v1572_v15 = vmul.f32 %v2750_v21, %v2742_v61 }
 0x645   : > { %v1563_v17 = vpop.xlane.xlu1 %1562 }
 0x646   : > { %2751 = vrcp.f32 %v1563_v17  ;;  %v2500_v17 = vld [vmem:[%s3280_s1] ss:$0 sm:$0xff]  ;;  %s3284_s1 = sld [smem:[#allocation14_spill]] (!%p2513_p5) }
 0x649   : > { %v1728_v18 = vpop.permute.xlu1 %1727  ;;  %v1566_v19 = vpop.xlane.xlu0 %1565 }
 0x64a   : > { %2753 = vrcp.f32 %v1566_v19  ;;  %2651 = vmatpush3.msra.mxu1 %v1728_v18 }
 0x64b   : > { %2660 = vmatprep.subr.bf16.mxu1 %v2777_v5 }
 0x64d   : > { %v1652_v20 = vpop.permute.xlu0 %1651  ;;  %v1804_v22 = vpop.permute.xlu1 %1803 }
 0x64e   : > { %2646 = vmatpush3.msra.mxu0 %v1652_v20 }
 0x64f   : > { %2648 = vmatmul.mubr.msk.f32.vlgmr.msra.gmra.mxu0 %vm1530_vm11, %v1572_v15  ;;  %2655 = vmatprep.subr.mxu0 %v2777_v5  ;;  %v2735_v15 = vld [vmem:[%s2955_s3 + $0x18] sm:$0xff]  }
 0x650   : > { %2656 = vmatpush3.msra.mxu0 %v1804_v22  ;;  %2657 = vmatprep.mubr.msk.f32.mxu0 %vm2778_vm8, %v2777_v5  ;;  %v2736_v22 = vld [vmem:[%s2955_s3 + $0x10] sm:$0xff]  }
 0x651   : > { %2668 = vmatprep.subr.bf16.mxu0 %v2777_v5 }
 0x653   : > { %v2752_v23 = vpop.eup %2751 }
 0x654   : > { %v1573_v24 = vmul.f32 %v2752_v23, %v2744_v6  ;;  %v2737_v23 = vld [vmem:[%s2955_s3 + $0x8] sm:$0xff]  }
 0x656   : > { %2653 = vmatmul.mubr.msk.f32.vlgmr.msra.gmra.mxu1 %vm1530_vm11, %v1573_v24  ;;  %v2738_v24 = vld [vmem:[%s2955_s3] sm:$0xff]  }
 0x657   : > { %v2754_v25 = vpop.eup %2753  ;;  %2664 = vmatprep.mubr.msk.bf16.mxu1 %vm2778_vm8, %v2777_v5  ;;  %2661 = vmatpush3.bf16.msra.mxu1 %v2731_v27 }
 0x658   : > { %v1574_v26 = vmul.f32 %v2754_v25, %v2746_v10  ;;  %2662 = vmatprep.subr.bf16.mxu1 %v2777_v5  ;;  %v2501_v25 = vld [vmem:[%s826_s10] ss:$0 sm:$0xff] }
 0x65a   : > { %2658 = vmatmul.mubr.msk.f32.vlgmr.msra.gmra.mxu0 %vm1530_vm11, %v1574_v26 }
 0x65b   : > { %2672 = vmatprep.mubr.msk.bf16.mxu0 %vm2778_vm8, %v2777_v5  ;;  %2663 = vmatpush3.bf16.msra.mxu1 %v2732_v31 }
 0x65c   : > { %2676 = vmatprep.subr.bf16.mxu1 %v2777_v5 }
 0x6a3   : > { %v1647_v28 = vpop.f32.mrf.mxu1 }
 0x6a5   : > { %v2644_v29 = vpop.f32.mrf.mxu1 }
 0x70f   : > { %v1723_v30 = vpop.f32.mrf.mxu0 }
 0x711   : > { %v2649_v32 = vpop.f32.mrf.mxu0 }
 0x716   : > { %v1799_v33 = vpop.f32.mrf.mxu1 }
 0x718   : > { %v2654_v34 = vpop.f32.mrf.mxu1 }
 0x71a   : > { %v1875_v35 = vpop.f32.mrf.mxu0 }
 0x71b   : > { %v2724_v36 = vpack.i.bf16 %v1875_v35, %v1799_v33 }
 0x71c   : > { %v2659_v37 = vpop.f32.mrf.mxu0 }
 0x71d   : > { %2725 = vrot.lane.b32.xlu0 %v2724_v36, %s2783_s21  ;;  %s3281_s21 = scalar_lea.vmem %s3240_s17, %s2913_s29 }
 0x78f   : > { %v2726_v38 = vpop.permute.xlu0 %2725 }
 0x790   : > { %v2728_v39 = vunpack.i.h.bf16 %v2726_v38  ;;  %v2727_v40 = vunpack.i.l.bf16 %v2726_v38 }
 0x792   : > { %v1888_v41 = vsel %vm1227_vm10, %v1723_v30, %v2728_v39  ;;  %v1887_v42 = vsel %vm1227_vm10, %v1647_v28, %v2727_v40 }
 0x793   : > { %v1889_v43 = vpack.c.bf16 %v1888_v41, %v1887_v42 }
 0x795   : > { %2665 = vmatmul.mubr.msk.bf16.vlgmr.msra.gmra.mxu1 %vm1140_vm9, %v1889_v43 }
 0x796   : > { %2684 = vmatprep.mubr.msk.bf16.mxu1 %vm2778_vm8, %v2777_v5  ;;  %2677 = vmatpush3.bf16.msra.mxu1 %v2735_v15 }
 0x797   : > { %2678 = vmatprep.subr.bf16.mxu1 %v2777_v5 }
 0x79a   : > { %2679 = vmatpush3.bf16.msra.mxu1 %v2736_v22 }
 0x79b   : > { %2680 = vmatprep.subr.bf16.mxu1 %v2777_v5 }
 0x79e   : > { %2681 = vmatpush3.bf16.msra.mxu1 %v2737_v23 }
 0x79f   : > { %2682 = vmatprep.subr.bf16.mxu1 %v2777_v5 }
 0x7a2   : > { %2683 = vmatpush3.bf16.msra.mxu1 %v2738_v24 }
 0x855   : > { %v1950_v45 = vpop.f32.mrf.mxu1 }
 0x856   : > { %v1951_v46 = vadd.f32 %v2495_v44, %v1950_v45 }
 0x857   : > { %v2666_v47 = vpop.f32.mrf.mxu1 }
 0x858   : > { %v1957_v48 = vadd.f32 %v1951_v46, %v3048_v7 }
 0x859   : > { %v1953_v49 = vpop.f32.mrf.mxu1 }
 0x85a   : > { %v1954_v50 = vadd.f32 %v2495_v44, %v1953_v49  ;;  %v1961_v51 = vsel %vm1140_vm9, %v1957_v48, 0.0 }
 0x85b   : > { %1962 = vadd.xlane.f32.xlu1 %v1961_v51  ;;  %v2667_v52 = vpop.f32.mrf.mxu1 }
 0x85c   : > { %v1958_v53 = vadd.f32 %v1954_v50, %v3050_v8  ;;  %v2733_v8 = vld [vmem:[%s2945_s8 + $0x8] sm:$0xff]   ;;  %s3279_s8 = scalar_lea.vmem %s3235_s12, %s2913_s29  ;;  %v2505_v50 = vld [vmem:[%s3281_s21] ss:$0 sm:$0xff] }
 0x85d   : > { %2669 = vmatpush3.bf16.msra.mxu0 %v2733_v8  ;;  %v2499_v12 = vld [vmem:[%s3279_s8] ss:$0 sm:$0xff]  ;;  %s3283_s8 = scalar_lea.vmem %s3242_s19, %s2913_s29 }
 0x85e   : > { %v1964_v54 = vsel %vm1140_vm9, %v1958_v53, 0.0  ;;  %2670 = vmatprep.subr.bf16.mxu0 %v2777_v5 }
 0x85f   : > { %1965 = vadd.xlane.f32.xlu0 %v1964_v54 }
 0x861   : > { %2671 = vmatpush3.bf16.msra.mxu0 %v2734_v0 }
 0x8e4   : > { %v1963_v55 = vpop.xlane.xlu1 %1962 }
 0x8e5   : > { %v1968_v56 = vmul.f32 0.03125, %v1963_v55 }
 0x8e7   : > { %v1970_v57 = vsub.f32 %v1957_v48, %v1968_v56 }
 0x8e8   : > { %v1966_v58 = vpop.xlane.xlu0 %1965 }
 0x8e9   : > { %v1969_v59 = vmul.f32 0.03125, %v1966_v58  ;;  %v1972_v60 = vmul.f32 %v1970_v57, %v1970_v57 }
 0x8eb   : > { %v1971_v7 = vsub.f32 %v1958_v53, %v1969_v59  ;;  %v1974_v61 = vsel %vm1140_vm9, %v1972_v60, 0.0 }
 0x8ec   : > { %1975 = vadd.xlane.f32.xlu0 %v1974_v61 }
 0x8ed   : > { %v1973_v62 = vmul.f32 %v1971_v7, %v1971_v7 }
 0x8ef   : > { %v1977_v63 = vsel %vm1140_vm9, %v1973_v62, 0.0 }
 0x8f0   : > { %1978 = vadd.xlane.f32.xlu1 %v1977_v63 }
 0x975   : > { %v1976_v1 = vpop.xlane.xlu0 %1975 }
 0x976   : > { %v1980_v2 = vmul.f32 0.03125, %v1976_v1 }
 0x978   : > { %v1982_v3 = vadd.f32 1e-05, %v1980_v2 }
 0x979   : > { %v1979_v4 = vpop.xlane.xlu1 %1978 }
 0x97a   : > { %2755 = vrsqrt.f32 %v1982_v3  ;;  %v1981_v6 = vmul.f32 0.03125, %v1979_v4 }
 0x97c   : > { %v1983_v9 = vadd.f32 1e-05, %v1981_v6 }
 0x97e   : > { %2757 = vrsqrt.f32 %v1983_v9 }
 0x987   : > { %v2756_v10 = vpop.eup %2755 }
 0x988   : > { %v1986_v11 = vmul.f32 %v2756_v10, %v1970_v57 }
 0x98a   : > { %v1994_v16 = vmul.f32 %v2499_v12, %v1986_v11 }
 0x98b   : > { %v2758_v13 = vpop.eup %2757 }
 0x98c   : > { %v1987_v14 = vmul.f32 %v2758_v13, %v1971_v7  ;;  %v2002_v19 = vadd.f32 %v2500_v17, %v1994_v16  ;;  %v2511_v16 = vld [vmem:[%s3282_s30] ss:$0 sm:$0xff] }
 0x98e   : > { %v1995_v18 = vmul.f32 %v2499_v12, %v1987_v14 }
 0x990   : > { %v2003_v21 = vadd.f32 %v2500_v17, %v1995_v18  ;;  %v2512_v18 = vld [vmem:[%s3283_s8] ss:$0 sm:$0xff] }
 0x992   : > { %v2004_v20 = vpack.c.bf16 %v2003_v21, %v2002_v19 }
 0x994   : > { %2673 = vmatmul.mubr.msk.bf16.vlgmr.msra.gmra.mxu0 %vm1140_vm9, %v2004_v20 }
 0xa54   : > { %v2065_v26 = vpop.f32.mrf.mxu0 }
 0xa55   : > { %v2066_v27 = vadd.f32 %v2501_v25, %v2065_v26 }
 0xa56   : > { %v2674_v28 = vpop.f32.mrf.mxu0 }
 0xa57   : > { %v2072_v29 = vmul.f32 %v2066_v27, %v2066_v27 }
 0xa58   : > { %v2068_v30 = vpop.f32.mrf.mxu0 }
 0xa59   : > { %v2074_v31 = vmul.f32 %v2072_v29, %v2066_v27  ;;  %v2069_v32 = vadd.f32 %v2501_v25, %v2068_v30 }
 0xa5a   : > { %v2675_v33 = vpop.f32.mrf.mxu0 }
 0xa5b   : > { %v2076_v34 = vmul.f32 0.044715, %v2074_v31  ;;  %v2073_v35 = vmul.f32 %v2069_v32, %v2069_v32 }
 0xa5d   : > { %v2078_v36 = vadd.f32 %v2076_v34, %v2066_v27  ;;  %v2075_v37 = vmul.f32 %v2073_v35, %v2069_v32 }
 0xa5f   : > { %v2080_v5 = vmul.f32 0.7978846, %v2078_v36  ;;  %v2077_v38 = vmul.f32 0.044715, %v2075_v37 }
 0xa61   : > { %2759 = vtanh.f32 %v2080_v5  ;;  %v2079_v39 = vadd.f32 %v2077_v38, %v2069_v32 }
 0xa63   : > { %v2081_v40 = vmul.f32 0.7978846, %v2079_v39 }
 0xa65   : > { %2761 = vtanh.f32 %v2081_v40 }
 0xa6e   : > { %v2760_v41 = vpop.eup %2759 }
 0xa6f   : > { %v2084_v42 = vadd.f32 1.0, %v2760_v41 }
 0xa71   : > { %v2086_v44 = vmul.f32 0.5, %v2084_v42 }
 0xa72   : > { %v2762_v43 = vpop.eup %2761 }
 0xa73   : > { %v2085_v45 = vadd.f32 1.0, %v2762_v43  ;;  %v2088_v47 = vmul.f32 %v2086_v44, %v2066_v27 }
 0xa75   : > { %v2087_v46 = vmul.f32 0.5, %v2085_v45 }
 0xa77   : > { %v2089_v48 = vmul.f32 %v2087_v46, %v2069_v32 }
 0xa79   : > { %v2090_v49 = vpack.c.bf16 %v2089_v48, %v2088_v47 }
 0xa7b   : > { %2685 = vmatmul.mubr.msk.bf16.vlgmr.msra.gmra.mxu1 %vm2130_vm12, %v2090_v49 }
 0xb3b   : > { %v2168_v51 = vpop.f32.mrf.mxu1 }
 0xb3c   : > { %v2169_v52 = vadd.f32 %v2505_v50, %v2168_v51 }
 0xb3d   : > { %v2686_v53 = vpop.f32.mrf.mxu1 }
 0xb3e   : > { %v2175_v54 = vadd.f32 %v2169_v52, %v2002_v19 }
 0xb3f   : > { %v2171_v55 = vpop.f32.mrf.mxu1 }
 0xb40   : > { %v2172_v56 = vadd.f32 %v2505_v50, %v2171_v55  ;;  %v2179_v57 = vsel %vm1140_vm9, %v2175_v54, 0.0 }
 0xb41   : > { %2180 = vadd.xlane.f32.xlu0 %v2179_v57  ;;  %v2687_v58 = vpop.f32.mrf.mxu1 }
 0xb42   : > { %v2176_v59 = vadd.f32 %v2172_v56, %v2003_v21 }
 0xb44   : > { %v2182_v60 = vsel %vm1140_vm9, %v2176_v59, 0.0 }
 0xb45   : > { %2183 = vadd.xlane.f32.xlu1 %v2182_v60 }
 0xbca   : > { %v2181_v7 = vpop.xlane.xlu0 %2180 }
 0xbcb   : > { %v2185_v61 = vmul.f32 0.03125, %v2181_v7 }
 0xbcd   : > { %v2187_v62 = vsub.f32 %v2175_v54, %v2185_v61 }
 0xbce   : > { %v2184_v63 = vpop.xlane.xlu1 %2183 }
 0xbcf   : > { %v2186_v8 = vmul.f32 0.03125, %v2184_v63  ;;  %v2189_v0 = vmul.f32 %v2187_v62, %v2187_v62 }
 0xbd1   : > { %v2188_v1 = vsub.f32 %v2176_v59, %v2186_v8  ;;  %v2191_v2 = vsel %vm1140_vm9, %v2189_v0, 0.0 }
 0xbd2   : > { %2192 = vadd.xlane.f32.xlu0 %v2191_v2 }
 0xbd3   : > { %v2190_v3 = vmul.f32 %v2188_v1, %v2188_v1 }
 0xbd5   : > { %v2194_v4 = vsel %vm1140_vm9, %v2190_v3, 0.0 }
 0xbd6   : > { %2195 = vadd.xlane.f32.xlu1 %v2194_v4 }
 0xc5b   : > { %v2193_v6 = vpop.xlane.xlu0 %2192 }
 0xc5c   : > { %v2197_v9 = vmul.f32 0.03125, %v2193_v6 }
 0xc5e   : > { %v2199_v10 = vadd.f32 1e-05, %v2197_v9 }
 0xc5f   : > { %v2196_v11 = vpop.xlane.xlu1 %2195 }
 0xc60   : > { %2763 = vrsqrt.f32 %v2199_v10  ;;  %v2198_v12 = vmul.f32 0.03125, %v2196_v11 }
 0xc62   : > { %v2200_v13 = vadd.f32 1e-05, %v2198_v12 }
 0xc64   : > { %2765 = vrsqrt.f32 %v2200_v13 }
 0xc6d   : > { %v2764_v14 = vpop.eup %2763 }
 0xc6e   : > { %v2203_v17 = vmul.f32 %v2764_v14, %v2187_v62 }
 0xc70   : > { %v2211_v19 = vmul.f32 %v2511_v16, %v2203_v17 }
 0xc71   : > { %v2766_v21 = vpop.eup %2765 }
 0xc72   : > { %v2219_v20 = vadd.f32 %v2512_v18, %v2211_v19  ;;  %v2204_v15 = vmul.f32 %v2766_v21, %v2188_v1 }
 0xc74   : > { %2221 = vst.msk [vmem:[#allocation2] sm:$0xff] %vm1140_vm9, %v2219_v20  ;;  %v2212_v22 = vmul.f32 %v2511_v16, %v2204_v15  ;;  %2226 = sbr.rel (%p2513_p5) target bundleno = 3398 (0xd46), region = 116 }
 0xc76   : > { %v2220_v23 = vadd.f32 %v2512_v18, %v2212_v22 }
 0xc78   : > { %2222 = vst.msk [vmem:[#allocation2 + $0x8] sm:$0xff] %vm1140_vm9, %v2220_v23 }
 0xc79   : > { %v2235_v24 = vld [vmem:[%s3284_s1 + $0x18] sm:$0xff]  ;;  %v2784_v25 = vmov 0.0   ;;  %v2234_v26 = vld [vmem:[%s3284_s1 + $0x10] sm:$0xff]  ;;  %vm2785_vm13 = vmmov 0   ;;  %v2228_v27 = vrot.slane %v2220_v23, 7  ;;  %v2233_v28 = vld [vmem:[%s3284_s1 + $0x8] sm:$0xff] }
 0xc7a   : > { %2688 = vmatprep.subr.mxu0 %v2784_v25  ;;  %2696 = vmatprep.mubr.msk.f32.mxu0 %vm2785_vm13, %v2784_v25  ;;  %vm2230_vm14 = vcmask 1040384   ;;  %v2232_v29 = vld [vmem:[%s3284_s1] sm:$0xff] }
 0xc7b   : > { %2689 = vmatpush3.msra.mxu0 %v2235_v24  ;;  %v2231_v30 = vsel %vm2230_vm14, %v2219_v20, %v2228_v27  ;;  %v2514_v31 = vld [vmem:[%s3285_s0] ss:$0 sm:$0xff] }
 0xc7c   : > { %2690 = vmatprep.subr.mxu0 %v2784_v25 }
 0xc7d   : > { %2691 = vmatpush3.msra.mxu0 %v2234_v26 }
 0xc7e   : > { %2692 = vmatprep.subr.mxu0 %v2784_v25 }
 0xc7f   : > { %2693 = vmatpush3.msra.mxu0 %v2233_v28 }
 0xc80   : > { %2694 = vmatprep.subr.mxu0 %v2784_v25 }
 0xc81   : > { %2695 = vmatpush3.msra.mxu0 %v2232_v29 }
 0xc82   : > { %2697 = vmatmul.mubr.msk.f32.vlgmr.msra.gmra.mxu0 %vm1140_vm9, %v2231_v30 }
 0xd42   : > { %v2312_v32 = vpop.f32.mrf.mxu0 }
 0xd43   : > { %v2313_v33 = vadd.f32 %v2514_v31, %v2312_v32 }
 0xd44   : > { %v2698_v34 = vpop.f32.mrf.mxu0 }
 0xd45   : > { %2316 = vst [vmem:[%s3286_s6] sm:$0x3] %v2313_v33 }
 0xd46 PF: > { %s3287_s8 = sld [smem:[#allocation3_spill]] }
 0xd4c   : > { %s32_s3 = sadd.s32 1, %s3287_s8  }
 0xd4d   : > { %p29_p6 = scmp.ge.s32.totalorder %s32_s3, 4  }
 0xd4f   :  { %31 = sbr.rel (!%p29_p6) target bundleno = 13 (0xd), region = 175 }

</bundles_post_ra>
